<compile_context>
chip_gen: v7x
topology: tpu7x:2x2x1
jax: 0.10.0
libtpu: 0.0.40
codegen_flags: <defaults>
</compile_context>

<pallas_src>
import functools

import jax
import jax.numpy as jnp
from jax.experimental import pallas as pl
from jax.experimental.pallas import tpu as pltpu  # noqa: F401  (kept for scratch/params if scaled up)


CFG = dict(
    image_size=16, patch_size=8, num_channels=3,
    hidden_size=64, num_heads=4, num_layers=2,
    intermediate_size=256, embed_dim=32, layer_norm_eps=1e-12,
)


# ------------------------------ fused kernel --------------------------------

def _encoder_kernel(patches_ref, patch_w_ref, addend_ref,
                    ln1_g_ref, ln1_b_ref, wqkv_ref, bqkv_ref, wo_ref, bo_ref,
                    ln2_g_ref, ln2_b_ref, wi_ref, bi_ref, wo2_ref, bo2_ref,
                    lnf_g_ref, lnf_b_ref, head_w_ref, head_b_ref,
                    out_ref,
                    *, B, S, S_pad, D, nh, dh, num_layers, eps):
    f32 = jnp.float32
    bf16 = jnp.bfloat16
    M = B * S_pad

    def layernorm(x, g, b):
        mean = jnp.mean(x, axis=-1, keepdims=True)
        var = jnp.mean(jnp.square(x - mean), axis=-1, keepdims=True)
        return (x - mean) * jax.lax.rsqrt(var + eps) * g + b

    def matmul_bias(x, w, b):
        # bf16 MXU inputs, f32 accumulation; bias add / downstream elementwise stay f32.
        return jnp.dot(x.astype(bf16), w, preferred_element_type=f32) + b

    # ---- patch embedding (Conv2d k=p, s=p == im2col matmul) as ONE matmul ----
    # patches rows are (b, token): zero rows at the CLS / pad slots, real patches else.
    # addend rows: cls_token+pos[0] | conv_bias+pos[1:] | 0 (pad)  -> pad rows stay 0.
    tok = jnp.dot(patches_ref[...].astype(bf16), patch_w_ref[...],
                  preferred_element_type=f32)                       # (M, D)
    h = (tok.reshape(B, S_pad, D) + addend_ref[...]).reshape(M, D)

    # ---- transformer layers (statically unrolled; weights stacked on layer axis) ----
    for l in range(num_layers):
        # pre-LN MHSA with fused QKV (1/sqrt(dh) pre-folded into Wq/bq) + residual
        x2 = layernorm(h, ln1_g_ref[l], ln1_b_ref[l])
        qkv = matmul_bias(x2, wqkv_ref[l], bqkv_ref[l]).astype(bf16)  # (M, 3D) bf16

        def head_slab(base):
            # gather per-head dh columns into one head-major (nh*B, S_pad, dh) slab
            return jnp.concatenate(
                [qkv[:, base + hh * dh: base + (hh + 1) * dh].reshape(B, S_pad, dh)
                 for hh in range(nh)], axis=0)

        q = head_slab(0)            # scale already folded into Wq/bq
        k = head_slab(D)
        v = head_slab(2 * D)

        # batched scores over all (head, batch) pairs; no explicit k transpose.
        s = jnp.einsum('bqd,bkd->bqk', q, k,
                       preferred_element_type=f32)                  # (nh*B, S_pad, S_pad)
        kmask = jax.lax.broadcasted_iota(jnp.int32, s.shape, 2) < S
        s = jnp.where(kmask, s, -1e30)                               # mask padded keys
        s = s - jnp.max(s, axis=-1, keepdims=True)
        p = jnp.exp(s)
        p = p * pl.reciprocal(jnp.sum(p, axis=-1, keepdims=True), approx=True)
        ctx_hm = jnp.einsum('bqk,bkd->bqd', p.astype(bf16), v,
                            preferred_element_type=f32)             # (nh*B, S_pad, dh)
        # back to head-concatenated (M, D) layout expected by Wo
        ctx = jnp.concatenate(
            [ctx_hm[hh * B:(hh + 1) * B].reshape(M, dh) for hh in range(nh)], axis=1)
        h = h + matmul_bias(ctx, wo_ref[l], bo_ref[l])

        # pre-LN MLP (Linear -> GELU -> Linear) + residual
        x3 = layernorm(h, ln2_g_ref[l], ln2_b_ref[l])
        # TODO(synk): HF ViT default is exact (erf) GELU; tanh approximation is used so
        # the transcendental lowers cleanly to the TPU EUP.
        inter = jax.nn.gelu(matmul_bias(x3, wi_ref[l], bi_ref[l]), approximate=True)
        h = h + matmul_bias(inter, wo2_ref[l], bo2_ref[l])

    # ---- final LayerNorm on the CLS rows + cls_head as one (B, D) @ (D, E) matmul ----
    cls = jnp.concatenate([h[b * S_pad:b * S_pad + 1, :] for b in range(B)], axis=0)
    cls = layernorm(cls, lnf_g_ref[...], lnf_b_ref[...])
    out_ref[...] = matmul_bias(cls, head_w_ref[...], head_b_ref[...])


# ------------------------------ model setup ---------------------------------

def init_params(key, cfg):
    p = cfg["patch_size"]; C = cfg["num_channels"]; D = cfg["hidden_size"]
    I = cfg["intermediate_size"]; E = cfg["embed_dim"]
    n_patches = (cfg["image_size"] // p) ** 2
    S = n_patches + 1

    def nrm(k, shape, scale=0.02):
        return scale * jax.random.normal(k, shape, dtype=jnp.float32)

    keys = iter(jax.random.split(key, 64))
    params = {
        # Conv2d(C, D, kernel=p, stride=p) flattened to (C*p*p, D) matmul weight.
        "patch_w": nrm(next(keys), (C * p * p, D)),
        "patch_b": jnp.zeros((D,), jnp.float32),
        "cls_token": nrm(next(keys), (1, 1, D)),
        "pos_embed": nrm(next(keys), (1, S, D)),
        "ln_f_g": jnp.ones((D,), jnp.float32),
        "ln_f_b": jnp.zeros((D,), jnp.float32),
        "head_w": nrm(next(keys), (D, E)),
        "head_b": jnp.zeros((E,), jnp.float32),
        "layers": [],
    }
    for _ in range(cfg["num_layers"]):
        params["layers"].append({
            "ln1_g": jnp.ones((D,), jnp.float32), "ln1_b": jnp.zeros((D,), jnp.float32),
            "wq": nrm(next(keys), (D, D)), "bq": jnp.zeros((D,), jnp.float32),
            "wk": nrm(next(keys), (D, D)), "bk": jnp.zeros((D,), jnp.float32),
            "wv": nrm(next(keys), (D, D)), "bv": jnp.zeros((D,), jnp.float32),
            "wo": nrm(next(keys), (D, D)), "bo": jnp.zeros((D,), jnp.float32),
            "ln2_g": jnp.ones((D,), jnp.float32), "ln2_b": jnp.zeros((D,), jnp.float32),
            "wi": nrm(next(keys), (D, I)), "bi": jnp.zeros((I,), jnp.float32),
            "wo2": nrm(next(keys), (I, D)), "bo2": jnp.zeros((D,), jnp.float32),
        })
    return params


def prepare_params(params, cfg):
    """One-time host-side prep: stack per-layer weights on a leading layer axis, fuse QKV
    into one (D, 3D) weight with 1/sqrt(dh) folded into Wq/bq, pre-build the padded
    patch-embed row addend (cls+pos | conv_bias+pos | 0), cast matmul weights to bf16."""
    p = cfg["patch_size"]; D = cfg["hidden_size"]; nh = cfg["num_heads"]; dh = D // nh
    n_patches = (cfg["image_size"] // p) ** 2
    S = n_patches + 1
    S_pad = ((S + 7) // 8) * 8
    scale = 1.0 / float(dh) ** 0.5
    bf16 = jnp.bfloat16

    def stack(name):
        return jnp.stack([lp[name] for lp in params["layers"]], axis=0)

    wqkv = jnp.concatenate([stack("wq") * scale, stack("wk"), stack("wv")], axis=-1)
    bqkv = jnp.concatenate([stack("bq") * scale, stack("bk"), stack("bv")], axis=-1)

    addend = jnp.zeros((S_pad, D), jnp.float32)
    addend = addend.at[0].set(params["cls_token"][0, 0] + params["pos_embed"][0, 0])
    addend = addend.at[1:S].set(params["patch_b"][None, :] + params["pos_embed"][0, 1:])

    return dict(
        patch_w=params["patch_w"].astype(bf16),
        addend=addend,                                                   # (S_pad, D)
        ln1_g=stack("ln1_g")[:, None, :], ln1_b=stack("ln1_b")[:, None, :],
        wqkv=wqkv.astype(bf16), bqkv=bqkv[:, None, :],
        wo=stack("wo").astype(bf16), bo=stack("bo")[:, None, :],
        ln2_g=stack("ln2_g")[:, None, :], ln2_b=stack("ln2_b")[:, None, :],
        wi=stack("wi").astype(bf16), bi=stack("bi")[:, None, :],
        wo2=stack("wo2").astype(bf16), bo2=stack("bo2")[:, None, :],
        lnf_g=params["ln_f_g"][None, :], lnf_b=params["ln_f_b"][None, :],
        head_w=params["head_w"].astype(bf16), head_b=params["head_b"][None, :],
    )


def encoder_forward(x, fp, cfg):
    """x: (B, C, H, W) NCHW float32 -> (B, embed_dim) float32, via one fused Pallas kernel."""
    B, C, H, W = x.shape
    p = cfg["patch_size"]; D = cfg["hidden_size"]
    nh = cfg["num_heads"]; dh = D // nh
    E = cfg["embed_dim"]; L = cfg["num_layers"]; eps = cfg["layer_norm_eps"]
    nP = (H // p) * (W // p); S = nP + 1
    S_pad = ((S + 7) // 8) * 8          # pad tokens to a whole sublane tile
    Cpp = C * p * p

    # im2col glue (layout plumbing only): (B,C,H,W) -> (B, nP, C*p*p), then insert zero
    # rows at the CLS / pad slots so the patch embed is ONE dense (B*S_pad, Cpp) matmul.
    patches = x.reshape(B, C, H // p, p, W // p, p)
    patches = patches.transpose(0, 2, 4, 1, 3, 5).reshape(B, nP, Cpp)
    patches = jnp.concatenate(
        [jnp.zeros((B, 1, Cpp), x.dtype), patches,
         jnp.zeros((B, S_pad - S, Cpp), x.dtype)], axis=1).reshape(B * S_pad, Cpp)

    kernel = functools.partial(
        _encoder_kernel, B=B, S=S, S_pad=S_pad, D=D, nh=nh, dh=dh,
        num_layers=L, eps=eps)

    # Gridless single invocation: whole working set (<1 MiB) is VMEM/vreg resident.
    return pl.pallas_call(
        kernel,
        out_shape=jax.ShapeDtypeStruct((B, E), jnp.float32),
    )(patches, fp["patch_w"], fp["addend"],
      fp["ln1_g"], fp["ln1_b"], fp["wqkv"], fp["bqkv"], fp["wo"], fp["bo"],
      fp["ln2_g"], fp["ln2_b"], fp["wi"], fp["bi"], fp["wo2"], fp["bo2"],
      fp["lnf_g"], fp["lnf_b"], fp["head_w"], fp["head_b"])


# ---------------------------------- main -------------------------------------

if __name__ == "__main__":
    key = jax.random.PRNGKey(0)
    k_x, k_p = jax.random.split(key)

    B = 2
    x = jax.random.normal(
        k_x, (B, CFG["num_channels"], CFG["image_size"], CFG["image_size"]),
        dtype=jnp.float32)

    params = init_params(k_p, CFG)
    fused_params = prepare_params(params, CFG)

    fwd = jax.jit(functools.partial(encoder_forward, cfg=CFG))
    emb = fwd(x, fused_params)
    emb = jax.block_until_ready(emb)

    assert emb.shape == (B, CFG["embed_dim"]), emb.shape
    assert emb.dtype == jnp.float32
    assert bool(jnp.all(jnp.isfinite(emb)))
    print("KERNEL_OK")
</pallas_src>

<mosaic_0001>
module attributes {stable_mosaic.version = 11 : i64} {
  func.func @_encoder_kernel(%arg0: memref<16x192xf32, #tpu.memory_space<vmem>>, %arg1: memref<192x64xbf16, #tpu.memory_space<vmem>>, %arg2: memref<8x64xf32, #tpu.memory_space<vmem>>, %arg3: memref<2x1x64xf32, #tpu.memory_space<vmem>>, %arg4: memref<2x1x64xf32, #tpu.memory_space<vmem>>, %arg5: memref<2x64x192xbf16, #tpu.memory_space<vmem>>, %arg6: memref<2x1x192xf32, #tpu.memory_space<vmem>>, %arg7: memref<2x64x64xbf16, #tpu.memory_space<vmem>>, %arg8: memref<2x1x64xf32, #tpu.memory_space<vmem>>, %arg9: memref<2x1x64xf32, #tpu.memory_space<vmem>>, %arg10: memref<2x1x64xf32, #tpu.memory_space<vmem>>, %arg11: memref<2x64x256xbf16, #tpu.memory_space<vmem>>, %arg12: memref<2x1x256xf32, #tpu.memory_space<vmem>>, %arg13: memref<2x256x64xbf16, #tpu.memory_space<vmem>>, %arg14: memref<2x1x64xf32, #tpu.memory_space<vmem>>, %arg15: memref<1x64xf32, #tpu.memory_space<vmem>>, %arg16: memref<1x64xf32, #tpu.memory_space<vmem>>, %arg17: memref<64x32xbf16, #tpu.memory_space<vmem>>, %arg18: memref<1x32xf32, #tpu.memory_space<vmem>>, %arg19: memref<2x32xf32, #tpu.memory_space<vmem>>) attributes {dimension_semantics = [], scalar_prefetch = 0 : i64, scratch_operands = 0 : i64, tpu.core_type = #tpu.core_type<tc>} {
    %c0 = arith.constant 0 : index
    %c0_0 = arith.constant 0 : index
    %0 = vector.load %arg0[%c0, %c0_0] : memref<16x192xf32, #tpu.memory_space<vmem>>, vector<16x192xf32>
    %1 = arith.truncf %0 : vector<16x192xf32> to vector<16x192xbf16>
    %c0_1 = arith.constant 0 : index
    %c0_2 = arith.constant 0 : index
    %2 = vector.load %arg1[%c0_1, %c0_2] : memref<192x64xbf16, #tpu.memory_space<vmem>>, vector<192x64xbf16>
    %cst = arith.constant dense<0.000000e+00> : vector<16x64xf32>
    %3 = tpu.matmul %1, %2, %cst {dimension_numbers = #tpu.dot_dimension_numbers<[1], [0], [0], [1], [0, 0, 1, 1], [], []>} : vector<16x192xbf16>, vector<192x64xbf16>, vector<16x64xf32> -> vector<16x64xf32>
    %4 = vector.shape_cast %3 : vector<16x64xf32> to vector<2x8x64xf32>
    %c0_3 = arith.constant 0 : index
    %c0_4 = arith.constant 0 : index
    %5 = vector.load %arg2[%c0_3, %c0_4] : memref<8x64xf32, #tpu.memory_space<vmem>>, vector<8x64xf32>
    %6 = vector.shape_cast %5 : vector<8x64xf32> to vector<1x8x64xf32>
    %7 = vector.broadcast %6 : vector<1x8x64xf32> to vector<2x8x64xf32>
    %8 = arith.addf %4, %7 : vector<2x8x64xf32>
    %9 = vector.shape_cast %8 : vector<2x8x64xf32> to vector<16x64xf32>
    %c0_5 = arith.constant 0 : index
    %c0_6 = arith.constant 0 : index
    %c0_7 = arith.constant 0 : index
    %10 = vector.load %arg3[%c0_5, %c0_6, %c0_7] : memref<2x1x64xf32, #tpu.memory_space<vmem>>, vector<1x1x64xf32>
    %11 = vector.shape_cast %10 : vector<1x1x64xf32> to vector<1x64xf32>
    %c0_8 = arith.constant 0 : index
    %c0_9 = arith.constant 0 : index
    %c0_10 = arith.constant 0 : index
    %12 = vector.load %arg4[%c0_8, %c0_9, %c0_10] : memref<2x1x64xf32, #tpu.memory_space<vmem>>, vector<1x1x64xf32>
    %13 = vector.shape_cast %12 : vector<1x1x64xf32> to vector<1x64xf32>
    %cst_11 = arith.constant dense<0.000000e+00> : vector<16xf32>
    %14 = vector.multi_reduction <add>, %9, %cst_11 [1] : vector<16x64xf32> to vector<16xf32>
    %15 = vector.shape_cast %14 : vector<16xf32> to vector<16x1xf32>
    %cst_12 = arith.constant 6.400000e+01 : f32
    %16 = vector.broadcast %cst_12 : f32 to vector<16x1xf32>
    %17 = arith.divf %15, %16 : vector<16x1xf32>
    %18 = vector.broadcast %17 : vector<16x1xf32> to vector<16x64xf32>
    %19 = arith.subf %9, %18 : vector<16x64xf32>
    %20 = arith.mulf %19, %19 : vector<16x64xf32>
    %cst_13 = arith.constant dense<0.000000e+00> : vector<16xf32>
    %21 = vector.multi_reduction <add>, %20, %cst_13 [1] : vector<16x64xf32> to vector<16xf32>
    %22 = vector.shape_cast %21 : vector<16xf32> to vector<16x1xf32>
    %cst_14 = arith.constant 6.400000e+01 : f32
    %23 = vector.broadcast %cst_14 : f32 to vector<16x1xf32>
    %24 = arith.divf %22, %23 : vector<16x1xf32>
    %25 = vector.broadcast %17 : vector<16x1xf32> to vector<16x64xf32>
    %26 = arith.subf %9, %25 : vector<16x64xf32>
    %cst_15 = arith.constant 9.99999996E-13 : f32
    %27 = vector.broadcast %cst_15 : f32 to vector<16x1xf32>
    %28 = arith.addf %24, %27 : vector<16x1xf32>
    %29 = math.rsqrt %28 : vector<16x1xf32>
    %30 = vector.broadcast %29 : vector<16x1xf32> to vector<16x64xf32>
    %31 = arith.mulf %26, %30 : vector<16x64xf32>
    %32 = vector.broadcast %11 : vector<1x64xf32> to vector<16x64xf32>
    %33 = arith.mulf %31, %32 : vector<16x64xf32>
    %34 = vector.broadcast %13 : vector<1x64xf32> to vector<16x64xf32>
    %35 = arith.addf %33, %34 : vector<16x64xf32>
    %c0_16 = arith.constant 0 : index
    %c0_17 = arith.constant 0 : index
    %c0_18 = arith.constant 0 : index
    %36 = vector.load %arg5[%c0_16, %c0_17, %c0_18] : memref<2x64x192xbf16, #tpu.memory_space<vmem>>, vector<1x64x192xbf16>
    %37 = vector.shape_cast %36 : vector<1x64x192xbf16> to vector<64x192xbf16>
    %c0_19 = arith.constant 0 : index
    %c0_20 = arith.constant 0 : index
    %c0_21 = arith.constant 0 : index
    %38 = vector.load %arg6[%c0_19, %c0_20, %c0_21] : memref<2x1x192xf32, #tpu.memory_space<vmem>>, vector<1x1x192xf32>
    %39 = vector.shape_cast %38 : vector<1x1x192xf32> to vector<1x192xf32>
    %40 = arith.truncf %35 : vector<16x64xf32> to vector<16x64xbf16>
    %cst_22 = arith.constant dense<0.000000e+00> : vector<16x192xf32>
    %41 = tpu.matmul %40, %37, %cst_22 {dimension_numbers = #tpu.dot_dimension_numbers<[1], [0], [0], [1], [0, 0, 1, 1], [], []>} : vector<16x64xbf16>, vector<64x192xbf16>, vector<16x192xf32> -> vector<16x192xf32>
    %42 = vector.broadcast %39 : vector<1x192xf32> to vector<16x192xf32>
    %43 = arith.addf %41, %42 : vector<16x192xf32>
    %44 = arith.truncf %43 : vector<16x192xf32> to vector<16x192xbf16>
    %45 = vector.extract_strided_slice %44 {offsets = [0, 0], sizes = [16, 16], strides = [1, 1]} : vector<16x192xbf16> to vector<16x16xbf16>
    %46 = vector.shape_cast %45 : vector<16x16xbf16> to vector<2x8x16xbf16>
    %47 = vector.extract_strided_slice %44 {offsets = [0, 16], sizes = [16, 16], strides = [1, 1]} : vector<16x192xbf16> to vector<16x16xbf16>
    %48 = vector.shape_cast %47 : vector<16x16xbf16> to vector<2x8x16xbf16>
    %49 = vector.extract_strided_slice %44 {offsets = [0, 32], sizes = [16, 16], strides = [1, 1]} : vector<16x192xbf16> to vector<16x16xbf16>
    %50 = vector.shape_cast %49 : vector<16x16xbf16> to vector<2x8x16xbf16>
    %51 = vector.extract_strided_slice %44 {offsets = [0, 48], sizes = [16, 16], strides = [1, 1]} : vector<16x192xbf16> to vector<16x16xbf16>
    %52 = vector.shape_cast %51 : vector<16x16xbf16> to vector<2x8x16xbf16>
    %53 = tpu.concatenate %46, %48, %50, %52 in 0 : vector<2x8x16xbf16>, vector<2x8x16xbf16>, vector<2x8x16xbf16>, vector<2x8x16xbf16> -> vector<8x8x16xbf16>
    %54 = vector.extract_strided_slice %44 {offsets = [0, 64], sizes = [16, 16], strides = [1, 1]} : vector<16x192xbf16> to vector<16x16xbf16>
    %55 = vector.shape_cast %54 : vector<16x16xbf16> to vector<2x8x16xbf16>
    %56 = vector.extract_strided_slice %44 {offsets = [0, 80], sizes = [16, 16], strides = [1, 1]} : vector<16x192xbf16> to vector<16x16xbf16>
    %57 = vector.shape_cast %56 : vector<16x16xbf16> to vector<2x8x16xbf16>
    %58 = vector.extract_strided_slice %44 {offsets = [0, 96], sizes = [16, 16], strides = [1, 1]} : vector<16x192xbf16> to vector<16x16xbf16>
    %59 = vector.shape_cast %58 : vector<16x16xbf16> to vector<2x8x16xbf16>
    %60 = vector.extract_strided_slice %44 {offsets = [0, 112], sizes = [16, 16], strides = [1, 1]} : vector<16x192xbf16> to vector<16x16xbf16>
    %61 = vector.shape_cast %60 : vector<16x16xbf16> to vector<2x8x16xbf16>
    %62 = tpu.concatenate %55, %57, %59, %61 in 0 : vector<2x8x16xbf16>, vector<2x8x16xbf16>, vector<2x8x16xbf16>, vector<2x8x16xbf16> -> vector<8x8x16xbf16>
    %63 = vector.extract_strided_slice %44 {offsets = [0, 128], sizes = [16, 16], strides = [1, 1]} : vector<16x192xbf16> to vector<16x16xbf16>
    %64 = vector.shape_cast %63 : vector<16x16xbf16> to vector<2x8x16xbf16>
    %65 = vector.extract_strided_slice %44 {offsets = [0, 144], sizes = [16, 16], strides = [1, 1]} : vector<16x192xbf16> to vector<16x16xbf16>
    %66 = vector.shape_cast %65 : vector<16x16xbf16> to vector<2x8x16xbf16>
    %67 = vector.extract_strided_slice %44 {offsets = [0, 160], sizes = [16, 16], strides = [1, 1]} : vector<16x192xbf16> to vector<16x16xbf16>
    %68 = vector.shape_cast %67 : vector<16x16xbf16> to vector<2x8x16xbf16>
    %69 = vector.extract_strided_slice %44 {offsets = [0, 176], sizes = [16, 16], strides = [1, 1]} : vector<16x192xbf16> to vector<16x16xbf16>
    %70 = vector.shape_cast %69 : vector<16x16xbf16> to vector<2x8x16xbf16>
    %71 = tpu.concatenate %64, %66, %68, %70 in 0 : vector<2x8x16xbf16>, vector<2x8x16xbf16>, vector<2x8x16xbf16>, vector<2x8x16xbf16> -> vector<8x8x16xbf16>
    "tpu.trace_start"() <{level = 10 : i32, message = "bqd,bkd->bqk"}> : () -> ()
    %cst_23 = arith.constant dense<0.000000e+00> : vector<8x8x8xf32>
    %72 = tpu.matmul %53, %62, %cst_23 {dimension_numbers = #tpu.dot_dimension_numbers<[2], [2], [1], [1], [0, 0, 0, 1, 1, 1], [0], [0]>} : vector<8x8x16xbf16>, vector<8x8x16xbf16>, vector<8x8x8xf32> -> vector<8x8x8xf32>
    "tpu.trace_stop"() : () -> ()
    %73 = tpu.iota {dimensions = array<i32: 2>} : vector<8x8x8xi32>
    %c5_i32 = arith.constant 5 : i32
    %74 = vector.broadcast %c5_i32 : i32 to vector<8x8x8xi32>
    %75 = arith.cmpi slt, %73, %74 : vector<8x8x8xi32>
    %cst_24 = arith.constant -1.000000e+30 : f32
    %76 = vector.broadcast %cst_24 : f32 to vector<8x8x8xf32>
    %77 = arith.select %75, %72, %76 : vector<8x8x8xi1>, vector<8x8x8xf32>
    %cst_25 = arith.constant dense<0xFF800000> : vector<8x8xf32>
    %78 = vector.multi_reduction <maximumf>, %77, %cst_25 [2] : vector<8x8x8xf32> to vector<8x8xf32>
    %79 = vector.shape_cast %78 : vector<8x8xf32> to vector<8x8x1xf32>
    %80 = vector.broadcast %79 : vector<8x8x1xf32> to vector<8x8x8xf32>
    %81 = arith.subf %77, %80 : vector<8x8x8xf32>
    %82 = math.exp %81 : vector<8x8x8xf32>
    %cst_26 = arith.constant dense<0.000000e+00> : vector<8x8xf32>
    %83 = vector.multi_reduction <add>, %82, %cst_26 [2] : vector<8x8x8xf32> to vector<8x8xf32>
    %84 = vector.shape_cast %83 : vector<8x8xf32> to vector<8x8x1xf32>
    %85 = tpu.reciprocal %84 {approx = true} : vector<8x8x1xf32> -> vector<8x8x1xf32>
    %86 = vector.broadcast %85 : vector<8x8x1xf32> to vector<8x8x8xf32>
    %87 = arith.mulf %82, %86 : vector<8x8x8xf32>
    %88 = arith.truncf %87 : vector<8x8x8xf32> to vector<8x8x8xbf16>
    "tpu.trace_start"() <{level = 10 : i32, message = "bqk,bkd->bqd"}> : () -> ()
    %cst_27 = arith.constant dense<0.000000e+00> : vector<8x8x16xf32>
    %89 = tpu.matmul %88, %71, %cst_27 {dimension_numbers = #tpu.dot_dimension_numbers<[2], [1], [1], [2], [0, 0, 0, 1, 1, 2], [0], [0]>} : vector<8x8x8xbf16>, vector<8x8x16xbf16>, vector<8x8x16xf32> -> vector<8x8x16xf32>
    "tpu.trace_stop"() : () -> ()
    %90 = vector.extract_strided_slice %89 {offsets = [0, 0, 0], sizes = [2, 8, 16], strides = [1, 1, 1]} : vector<8x8x16xf32> to vector<2x8x16xf32>
    %91 = vector.shape_cast %90 : vector<2x8x16xf32> to vector<16x16xf32>
    %92 = vector.extract_strided_slice %89 {offsets = [2, 0, 0], sizes = [2, 8, 16], strides = [1, 1, 1]} : vector<8x8x16xf32> to vector<2x8x16xf32>
    %93 = vector.shape_cast %92 : vector<2x8x16xf32> to vector<16x16xf32>
    %94 = vector.extract_strided_slice %89 {offsets = [4, 0, 0], sizes = [2, 8, 16], strides = [1, 1, 1]} : vector<8x8x16xf32> to vector<2x8x16xf32>
    %95 = vector.shape_cast %94 : vector<2x8x16xf32> to vector<16x16xf32>
    %96 = vector.extract_strided_slice %89 {offsets = [6, 0, 0], sizes = [2, 8, 16], strides = [1, 1, 1]} : vector<8x8x16xf32> to vector<2x8x16xf32>
    %97 = vector.shape_cast %96 : vector<2x8x16xf32> to vector<16x16xf32>
    %98 = tpu.concatenate %91, %93, %95, %97 in 1 : vector<16x16xf32>, vector<16x16xf32>, vector<16x16xf32>, vector<16x16xf32> -> vector<16x64xf32>
    %c0_28 = arith.constant 0 : index
    %c0_29 = arith.constant 0 : index
    %c0_30 = arith.constant 0 : index
    %99 = vector.load %arg7[%c0_28, %c0_29, %c0_30] : memref<2x64x64xbf16, #tpu.memory_space<vmem>>, vector<1x64x64xbf16>
    %100 = vector.shape_cast %99 : vector<1x64x64xbf16> to vector<64x64xbf16>
    %c0_31 = arith.constant 0 : index
    %c0_32 = arith.constant 0 : index
    %c0_33 = arith.constant 0 : index
    %101 = vector.load %arg8[%c0_31, %c0_32, %c0_33] : memref<2x1x64xf32, #tpu.memory_space<vmem>>, vector<1x1x64xf32>
    %102 = vector.shape_cast %101 : vector<1x1x64xf32> to vector<1x64xf32>
    %103 = arith.truncf %98 : vector<16x64xf32> to vector<16x64xbf16>
    %cst_34 = arith.constant dense<0.000000e+00> : vector<16x64xf32>
    %104 = tpu.matmul %103, %100, %cst_34 {dimension_numbers = #tpu.dot_dimension_numbers<[1], [0], [0], [1], [0, 0, 1, 1], [], []>} : vector<16x64xbf16>, vector<64x64xbf16>, vector<16x64xf32> -> vector<16x64xf32>
    %105 = vector.broadcast %102 : vector<1x64xf32> to vector<16x64xf32>
    %106 = arith.addf %104, %105 : vector<16x64xf32>
    %107 = arith.addf %9, %106 : vector<16x64xf32>
    %c0_35 = arith.constant 0 : index
    %c0_36 = arith.constant 0 : index
    %c0_37 = arith.constant 0 : index
    %108 = vector.load %arg9[%c0_35, %c0_36, %c0_37] : memref<2x1x64xf32, #tpu.memory_space<vmem>>, vector<1x1x64xf32>
    %109 = vector.shape_cast %108 : vector<1x1x64xf32> to vector<1x64xf32>
    %c0_38 = arith.constant 0 : index
    %c0_39 = arith.constant 0 : index
    %c0_40 = arith.constant 0 : index
    %110 = vector.load %arg10[%c0_38, %c0_39, %c0_40] : memref<2x1x64xf32, #tpu.memory_space<vmem>>, vector<1x1x64xf32>
    %111 = vector.shape_cast %110 : vector<1x1x64xf32> to vector<1x64xf32>
    %cst_41 = arith.constant dense<0.000000e+00> : vector<16xf32>
    %112 = vector.multi_reduction <add>, %107, %cst_41 [1] : vector<16x64xf32> to vector<16xf32>
    %113 = vector.shape_cast %112 : vector<16xf32> to vector<16x1xf32>
    %cst_42 = arith.constant 6.400000e+01 : f32
    %114 = vector.broadcast %cst_42 : f32 to vector<16x1xf32>
    %115 = arith.divf %113, %114 : vector<16x1xf32>
    %116 = vector.broadcast %115 : vector<16x1xf32> to vector<16x64xf32>
    %117 = arith.subf %107, %116 : vector<16x64xf32>
    %118 = arith.mulf %117, %117 : vector<16x64xf32>
    %cst_43 = arith.constant dense<0.000000e+00> : vector<16xf32>
    %119 = vector.multi_reduction <add>, %118, %cst_43 [1] : vector<16x64xf32> to vector<16xf32>
    %120 = vector.shape_cast %119 : vector<16xf32> to vector<16x1xf32>
    %cst_44 = arith.constant 6.400000e+01 : f32
    %121 = vector.broadcast %cst_44 : f32 to vector<16x1xf32>
    %122 = arith.divf %120, %121 : vector<16x1xf32>
    %123 = vector.broadcast %115 : vector<16x1xf32> to vector<16x64xf32>
    %124 = arith.subf %107, %123 : vector<16x64xf32>
    %cst_45 = arith.constant 9.99999996E-13 : f32
    %125 = vector.broadcast %cst_45 : f32 to vector<16x1xf32>
    %126 = arith.addf %122, %125 : vector<16x1xf32>
    %127 = math.rsqrt %126 : vector<16x1xf32>
    %128 = vector.broadcast %127 : vector<16x1xf32> to vector<16x64xf32>
    %129 = arith.mulf %124, %128 : vector<16x64xf32>
    %130 = vector.broadcast %109 : vector<1x64xf32> to vector<16x64xf32>
    %131 = arith.mulf %129, %130 : vector<16x64xf32>
    %132 = vector.broadcast %111 : vector<1x64xf32> to vector<16x64xf32>
    %133 = arith.addf %131, %132 : vector<16x64xf32>
    %c0_46 = arith.constant 0 : index
    %c0_47 = arith.constant 0 : index
    %c0_48 = arith.constant 0 : index
    %134 = vector.load %arg11[%c0_46, %c0_47, %c0_48] : memref<2x64x256xbf16, #tpu.memory_space<vmem>>, vector<1x64x256xbf16>
    %135 = vector.shape_cast %134 : vector<1x64x256xbf16> to vector<64x256xbf16>
    %c0_49 = arith.constant 0 : index
    %c0_50 = arith.constant 0 : index
    %c0_51 = arith.constant 0 : index
    %136 = vector.load %arg12[%c0_49, %c0_50, %c0_51] : memref<2x1x256xf32, #tpu.memory_space<vmem>>, vector<1x1x256xf32>
    %137 = vector.shape_cast %136 : vector<1x1x256xf32> to vector<1x256xf32>
    %138 = arith.truncf %133 : vector<16x64xf32> to vector<16x64xbf16>
    %cst_52 = arith.constant dense<0.000000e+00> : vector<16x256xf32>
    %139 = tpu.matmul %138, %135, %cst_52 {dimension_numbers = #tpu.dot_dimension_numbers<[1], [0], [0], [1], [0, 0, 1, 1], [], []>} : vector<16x64xbf16>, vector<64x256xbf16>, vector<16x256xf32> -> vector<16x256xf32>
    %140 = vector.broadcast %137 : vector<1x256xf32> to vector<16x256xf32>
    %141 = arith.addf %139, %140 : vector<16x256xf32>
    %142 = arith.mulf %141, %141 : vector<16x256xf32>
    %143 = arith.mulf %141, %142 : vector<16x256xf32>
    %cst_53 = arith.constant 4.471500e-02 : f32
    %144 = vector.broadcast %cst_53 : f32 to vector<16x256xf32>
    %145 = arith.mulf %144, %143 : vector<16x256xf32>
    %146 = arith.addf %141, %145 : vector<16x256xf32>
    %cst_54 = arith.constant 0.797884583 : f32
    %147 = vector.broadcast %cst_54 : f32 to vector<16x256xf32>
    %148 = arith.mulf %147, %146 : vector<16x256xf32>
    %149 = math.tanh %148 : vector<16x256xf32>
    %cst_55 = arith.constant 1.000000e+00 : f32
    %150 = vector.broadcast %cst_55 : f32 to vector<16x256xf32>
    %151 = arith.addf %150, %149 : vector<16x256xf32>
    %cst_56 = arith.constant 5.000000e-01 : f32
    %152 = vector.broadcast %cst_56 : f32 to vector<16x256xf32>
    %153 = arith.mulf %152, %151 : vector<16x256xf32>
    %154 = arith.mulf %141, %153 : vector<16x256xf32>
    %c0_57 = arith.constant 0 : index
    %c0_58 = arith.constant 0 : index
    %c0_59 = arith.constant 0 : index
    %155 = vector.load %arg13[%c0_57, %c0_58, %c0_59] : memref<2x256x64xbf16, #tpu.memory_space<vmem>>, vector<1x256x64xbf16>
    %156 = vector.shape_cast %155 : vector<1x256x64xbf16> to vector<256x64xbf16>
    %c0_60 = arith.constant 0 : index
    %c0_61 = arith.constant 0 : index
    %c0_62 = arith.constant 0 : index
    %157 = vector.load %arg14[%c0_60, %c0_61, %c0_62] : memref<2x1x64xf32, #tpu.memory_space<vmem>>, vector<1x1x64xf32>
    %158 = vector.shape_cast %157 : vector<1x1x64xf32> to vector<1x64xf32>
    %159 = arith.truncf %154 : vector<16x256xf32> to vector<16x256xbf16>
    %cst_63 = arith.constant dense<0.000000e+00> : vector<16x64xf32>
    %160 = tpu.matmul %159, %156, %cst_63 {dimension_numbers = #tpu.dot_dimension_numbers<[1], [0], [0], [1], [0, 0, 1, 1], [], []>} : vector<16x256xbf16>, vector<256x64xbf16>, vector<16x64xf32> -> vector<16x64xf32>
    %161 = vector.broadcast %158 : vector<1x64xf32> to vector<16x64xf32>
    %162 = arith.addf %160, %161 : vector<16x64xf32>
    %163 = arith.addf %107, %162 : vector<16x64xf32>
    %c1 = arith.constant 1 : index
    %c0_64 = arith.constant 0 : index
    %c0_65 = arith.constant 0 : index
    %164 = vector.load %arg3[%c1, %c0_64, %c0_65] : memref<2x1x64xf32, #tpu.memory_space<vmem>>, vector<1x1x64xf32>
    %165 = vector.shape_cast %164 : vector<1x1x64xf32> to vector<1x64xf32>
    %c1_66 = arith.constant 1 : index
    %c0_67 = arith.constant 0 : index
    %c0_68 = arith.constant 0 : index
    %166 = vector.load %arg4[%c1_66, %c0_67, %c0_68] : memref<2x1x64xf32, #tpu.memory_space<vmem>>, vector<1x1x64xf32>
    %167 = vector.shape_cast %166 : vector<1x1x64xf32> to vector<1x64xf32>
    %cst_69 = arith.constant dense<0.000000e+00> : vector<16xf32>
    %168 = vector.multi_reduction <add>, %163, %cst_69 [1] : vector<16x64xf32> to vector<16xf32>
    %169 = vector.shape_cast %168 : vector<16xf32> to vector<16x1xf32>
    %cst_70 = arith.constant 6.400000e+01 : f32
    %170 = vector.broadcast %cst_70 : f32 to vector<16x1xf32>
    %171 = arith.divf %169, %170 : vector<16x1xf32>
    %172 = vector.broadcast %171 : vector<16x1xf32> to vector<16x64xf32>
    %173 = arith.subf %163, %172 : vector<16x64xf32>
    %174 = arith.mulf %173, %173 : vector<16x64xf32>
    %cst_71 = arith.constant dense<0.000000e+00> : vector<16xf32>
    %175 = vector.multi_reduction <add>, %174, %cst_71 [1] : vector<16x64xf32> to vector<16xf32>
    %176 = vector.shape_cast %175 : vector<16xf32> to vector<16x1xf32>
    %cst_72 = arith.constant 6.400000e+01 : f32
    %177 = vector.broadcast %cst_72 : f32 to vector<16x1xf32>
    %178 = arith.divf %176, %177 : vector<16x1xf32>
    %179 = vector.broadcast %171 : vector<16x1xf32> to vector<16x64xf32>
    %180 = arith.subf %163, %179 : vector<16x64xf32>
    %cst_73 = arith.constant 9.99999996E-13 : f32
    %181 = vector.broadcast %cst_73 : f32 to vector<16x1xf32>
    %182 = arith.addf %178, %181 : vector<16x1xf32>
    %183 = math.rsqrt %182 : vector<16x1xf32>
    %184 = vector.broadcast %183 : vector<16x1xf32> to vector<16x64xf32>
    %185 = arith.mulf %180, %184 : vector<16x64xf32>
    %186 = vector.broadcast %165 : vector<1x64xf32> to vector<16x64xf32>
    %187 = arith.mulf %185, %186 : vector<16x64xf32>
    %188 = vector.broadcast %167 : vector<1x64xf32> to vector<16x64xf32>
    %189 = arith.addf %187, %188 : vector<16x64xf32>
    %c1_74 = arith.constant 1 : index
    %c0_75 = arith.constant 0 : index
    %c0_76 = arith.constant 0 : index
    %190 = vector.load %arg5[%c1_74, %c0_75, %c0_76] : memref<2x64x192xbf16, #tpu.memory_space<vmem>>, vector<1x64x192xbf16>
    %191 = vector.shape_cast %190 : vector<1x64x192xbf16> to vector<64x192xbf16>
    %c1_77 = arith.constant 1 : index
    %c0_78 = arith.constant 0 : index
    %c0_79 = arith.constant 0 : index
    %192 = vector.load %arg6[%c1_77, %c0_78, %c0_79] : memref<2x1x192xf32, #tpu.memory_space<vmem>>, vector<1x1x192xf32>
    %193 = vector.shape_cast %192 : vector<1x1x192xf32> to vector<1x192xf32>
    %194 = arith.truncf %189 : vector<16x64xf32> to vector<16x64xbf16>
    %cst_80 = arith.constant dense<0.000000e+00> : vector<16x192xf32>
    %195 = tpu.matmul %194, %191, %cst_80 {dimension_numbers = #tpu.dot_dimension_numbers<[1], [0], [0], [1], [0, 0, 1, 1], [], []>} : vector<16x64xbf16>, vector<64x192xbf16>, vector<16x192xf32> -> vector<16x192xf32>
    %196 = vector.broadcast %193 : vector<1x192xf32> to vector<16x192xf32>
    %197 = arith.addf %195, %196 : vector<16x192xf32>
    %198 = arith.truncf %197 : vector<16x192xf32> to vector<16x192xbf16>
    %199 = vector.extract_strided_slice %198 {offsets = [0, 0], sizes = [16, 16], strides = [1, 1]} : vector<16x192xbf16> to vector<16x16xbf16>
    %200 = vector.shape_cast %199 : vector<16x16xbf16> to vector<2x8x16xbf16>
    %201 = vector.extract_strided_slice %198 {offsets = [0, 16], sizes = [16, 16], strides = [1, 1]} : vector<16x192xbf16> to vector<16x16xbf16>
    %202 = vector.shape_cast %201 : vector<16x16xbf16> to vector<2x8x16xbf16>
    %203 = vector.extract_strided_slice %198 {offsets = [0, 32], sizes = [16, 16], strides = [1, 1]} : vector<16x192xbf16> to vector<16x16xbf16>
    %204 = vector.shape_cast %203 : vector<16x16xbf16> to vector<2x8x16xbf16>
    %205 = vector.extract_strided_slice %198 {offsets = [0, 48], sizes = [16, 16], strides = [1, 1]} : vector<16x192xbf16> to vector<16x16xbf16>
    %206 = vector.shape_cast %205 : vector<16x16xbf16> to vector<2x8x16xbf16>
    %207 = tpu.concatenate %200, %202, %204, %206 in 0 : vector<2x8x16xbf16>, vector<2x8x16xbf16>, vector<2x8x16xbf16>, vector<2x8x16xbf16> -> vector<8x8x16xbf16>
    %208 = vector.extract_strided_slice %198 {offsets = [0, 64], sizes = [16, 16], strides = [1, 1]} : vector<16x192xbf16> to vector<16x16xbf16>
    %209 = vector.shape_cast %208 : vector<16x16xbf16> to vector<2x8x16xbf16>
    %210 = vector.extract_strided_slice %198 {offsets = [0, 80], sizes = [16, 16], strides = [1, 1]} : vector<16x192xbf16> to vector<16x16xbf16>
    %211 = vector.shape_cast %210 : vector<16x16xbf16> to vector<2x8x16xbf16>
    %212 = vector.extract_strided_slice %198 {offsets = [0, 96], sizes = [16, 16], strides = [1, 1]} : vector<16x192xbf16> to vector<16x16xbf16>
    %213 = vector.shape_cast %212 : vector<16x16xbf16> to vector<2x8x16xbf16>
    %214 = vector.extract_strided_slice %198 {offsets = [0, 112], sizes = [16, 16], strides = [1, 1]} : vector<16x192xbf16> to vector<16x16xbf16>
    %215 = vector.shape_cast %214 : vector<16x16xbf16> to vector<2x8x16xbf16>
    %216 = tpu.concatenate %209, %211, %213, %215 in 0 : vector<2x8x16xbf16>, vector<2x8x16xbf16>, vector<2x8x16xbf16>, vector<2x8x16xbf16> -> vector<8x8x16xbf16>
    %217 = vector.extract_strided_slice %198 {offsets = [0, 128], sizes = [16, 16], strides = [1, 1]} : vector<16x192xbf16> to vector<16x16xbf16>
    %218 = vector.shape_cast %217 : vector<16x16xbf16> to vector<2x8x16xbf16>
    %219 = vector.extract_strided_slice %198 {offsets = [0, 144], sizes = [16, 16], strides = [1, 1]} : vector<16x192xbf16> to vector<16x16xbf16>
    %220 = vector.shape_cast %219 : vector<16x16xbf16> to vector<2x8x16xbf16>
    %221 = vector.extract_strided_slice %198 {offsets = [0, 160], sizes = [16, 16], strides = [1, 1]} : vector<16x192xbf16> to vector<16x16xbf16>
    %222 = vector.shape_cast %221 : vector<16x16xbf16> to vector<2x8x16xbf16>
    %223 = vector.extract_strided_slice %198 {offsets = [0, 176], sizes = [16, 16], strides = [1, 1]} : vector<16x192xbf16> to vector<16x16xbf16>
    %224 = vector.shape_cast %223 : vector<16x16xbf16> to vector<2x8x16xbf16>
    %225 = tpu.concatenate %218, %220, %222, %224 in 0 : vector<2x8x16xbf16>, vector<2x8x16xbf16>, vector<2x8x16xbf16>, vector<2x8x16xbf16> -> vector<8x8x16xbf16>
    "tpu.trace_start"() <{level = 10 : i32, message = "bqd,bkd->bqk"}> : () -> ()
    %cst_81 = arith.constant dense<0.000000e+00> : vector<8x8x8xf32>
    %226 = tpu.matmul %207, %216, %cst_81 {dimension_numbers = #tpu.dot_dimension_numbers<[2], [2], [1], [1], [0, 0, 0, 1, 1, 1], [0], [0]>} : vector<8x8x16xbf16>, vector<8x8x16xbf16>, vector<8x8x8xf32> -> vector<8x8x8xf32>
    "tpu.trace_stop"() : () -> ()
    %227 = tpu.iota {dimensions = array<i32: 2>} : vector<8x8x8xi32>
    %c5_i32_82 = arith.constant 5 : i32
    %228 = vector.broadcast %c5_i32_82 : i32 to vector<8x8x8xi32>
    %229 = arith.cmpi slt, %227, %228 : vector<8x8x8xi32>
    %cst_83 = arith.constant -1.000000e+30 : f32
    %230 = vector.broadcast %cst_83 : f32 to vector<8x8x8xf32>
    %231 = arith.select %229, %226, %230 : vector<8x8x8xi1>, vector<8x8x8xf32>
    %cst_84 = arith.constant dense<0xFF800000> : vector<8x8xf32>
    %232 = vector.multi_reduction <maximumf>, %231, %cst_84 [2] : vector<8x8x8xf32> to vector<8x8xf32>
    %233 = vector.shape_cast %232 : vector<8x8xf32> to vector<8x8x1xf32>
    %234 = vector.broadcast %233 : vector<8x8x1xf32> to vector<8x8x8xf32>
    %235 = arith.subf %231, %234 : vector<8x8x8xf32>
    %236 = math.exp %235 : vector<8x8x8xf32>
    %cst_85 = arith.constant dense<0.000000e+00> : vector<8x8xf32>
    %237 = vector.multi_reduction <add>, %236, %cst_85 [2] : vector<8x8x8xf32> to vector<8x8xf32>
    %238 = vector.shape_cast %237 : vector<8x8xf32> to vector<8x8x1xf32>
    %239 = tpu.reciprocal %238 {approx = true} : vector<8x8x1xf32> -> vector<8x8x1xf32>
    %240 = vector.broadcast %239 : vector<8x8x1xf32> to vector<8x8x8xf32>
    %241 = arith.mulf %236, %240 : vector<8x8x8xf32>
    %242 = arith.truncf %241 : vector<8x8x8xf32> to vector<8x8x8xbf16>
    "tpu.trace_start"() <{level = 10 : i32, message = "bqk,bkd->bqd"}> : () -> ()
    %cst_86 = arith.constant dense<0.000000e+00> : vector<8x8x16xf32>
    %243 = tpu.matmul %242, %225, %cst_86 {dimension_numbers = #tpu.dot_dimension_numbers<[2], [1], [1], [2], [0, 0, 0, 1, 1, 2], [0], [0]>} : vector<8x8x8xbf16>, vector<8x8x16xbf16>, vector<8x8x16xf32> -> vector<8x8x16xf32>
    "tpu.trace_stop"() : () -> ()
    %244 = vector.extract_strided_slice %243 {offsets = [0, 0, 0], sizes = [2, 8, 16], strides = [1, 1, 1]} : vector<8x8x16xf32> to vector<2x8x16xf32>
    %245 = vector.shape_cast %244 : vector<2x8x16xf32> to vector<16x16xf32>
    %246 = vector.extract_strided_slice %243 {offsets = [2, 0, 0], sizes = [2, 8, 16], strides = [1, 1, 1]} : vector<8x8x16xf32> to vector<2x8x16xf32>
    %247 = vector.shape_cast %246 : vector<2x8x16xf32> to vector<16x16xf32>
    %248 = vector.extract_strided_slice %243 {offsets = [4, 0, 0], sizes = [2, 8, 16], strides = [1, 1, 1]} : vector<8x8x16xf32> to vector<2x8x16xf32>
    %249 = vector.shape_cast %248 : vector<2x8x16xf32> to vector<16x16xf32>
    %250 = vector.extract_strided_slice %243 {offsets = [6, 0, 0], sizes = [2, 8, 16], strides = [1, 1, 1]} : vector<8x8x16xf32> to vector<2x8x16xf32>
    %251 = vector.shape_cast %250 : vector<2x8x16xf32> to vector<16x16xf32>
    %252 = tpu.concatenate %245, %247, %249, %251 in 1 : vector<16x16xf32>, vector<16x16xf32>, vector<16x16xf32>, vector<16x16xf32> -> vector<16x64xf32>
    %c1_87 = arith.constant 1 : index
    %c0_88 = arith.constant 0 : index
    %c0_89 = arith.constant 0 : index
    %253 = vector.load %arg7[%c1_87, %c0_88, %c0_89] : memref<2x64x64xbf16, #tpu.memory_space<vmem>>, vector<1x64x64xbf16>
    %254 = vector.shape_cast %253 : vector<1x64x64xbf16> to vector<64x64xbf16>
    %c1_90 = arith.constant 1 : index
    %c0_91 = arith.constant 0 : index
    %c0_92 = arith.constant 0 : index
    %255 = vector.load %arg8[%c1_90, %c0_91, %c0_92] : memref<2x1x64xf32, #tpu.memory_space<vmem>>, vector<1x1x64xf32>
    %256 = vector.shape_cast %255 : vector<1x1x64xf32> to vector<1x64xf32>
    %257 = arith.truncf %252 : vector<16x64xf32> to vector<16x64xbf16>
    %cst_93 = arith.constant dense<0.000000e+00> : vector<16x64xf32>
    %258 = tpu.matmul %257, %254, %cst_93 {dimension_numbers = #tpu.dot_dimension_numbers<[1], [0], [0], [1], [0, 0, 1, 1], [], []>} : vector<16x64xbf16>, vector<64x64xbf16>, vector<16x64xf32> -> vector<16x64xf32>
    %259 = vector.broadcast %256 : vector<1x64xf32> to vector<16x64xf32>
    %260 = arith.addf %258, %259 : vector<16x64xf32>
    %261 = arith.addf %163, %260 : vector<16x64xf32>
    %c1_94 = arith.constant 1 : index
    %c0_95 = arith.constant 0 : index
    %c0_96 = arith.constant 0 : index
    %262 = vector.load %arg9[%c1_94, %c0_95, %c0_96] : memref<2x1x64xf32, #tpu.memory_space<vmem>>, vector<1x1x64xf32>
    %263 = vector.shape_cast %262 : vector<1x1x64xf32> to vector<1x64xf32>
    %c1_97 = arith.constant 1 : index
    %c0_98 = arith.constant 0 : index
    %c0_99 = arith.constant 0 : index
    %264 = vector.load %arg10[%c1_97, %c0_98, %c0_99] : memref<2x1x64xf32, #tpu.memory_space<vmem>>, vector<1x1x64xf32>
    %265 = vector.shape_cast %264 : vector<1x1x64xf32> to vector<1x64xf32>
    %cst_100 = arith.constant dense<0.000000e+00> : vector<16xf32>
    %266 = vector.multi_reduction <add>, %261, %cst_100 [1] : vector<16x64xf32> to vector<16xf32>
    %267 = vector.shape_cast %266 : vector<16xf32> to vector<16x1xf32>
    %cst_101 = arith.constant 6.400000e+01 : f32
    %268 = vector.broadcast %cst_101 : f32 to vector<16x1xf32>
    %269 = arith.divf %267, %268 : vector<16x1xf32>
    %270 = vector.broadcast %269 : vector<16x1xf32> to vector<16x64xf32>
    %271 = arith.subf %261, %270 : vector<16x64xf32>
    %272 = arith.mulf %271, %271 : vector<16x64xf32>
    %cst_102 = arith.constant dense<0.000000e+00> : vector<16xf32>
    %273 = vector.multi_reduction <add>, %272, %cst_102 [1] : vector<16x64xf32> to vector<16xf32>
    %274 = vector.shape_cast %273 : vector<16xf32> to vector<16x1xf32>
    %cst_103 = arith.constant 6.400000e+01 : f32
    %275 = vector.broadcast %cst_103 : f32 to vector<16x1xf32>
    %276 = arith.divf %274, %275 : vector<16x1xf32>
    %277 = vector.broadcast %269 : vector<16x1xf32> to vector<16x64xf32>
    %278 = arith.subf %261, %277 : vector<16x64xf32>
    %cst_104 = arith.constant 9.99999996E-13 : f32
    %279 = vector.broadcast %cst_104 : f32 to vector<16x1xf32>
    %280 = arith.addf %276, %279 : vector<16x1xf32>
    %281 = math.rsqrt %280 : vector<16x1xf32>
    %282 = vector.broadcast %281 : vector<16x1xf32> to vector<16x64xf32>
    %283 = arith.mulf %278, %282 : vector<16x64xf32>
    %284 = vector.broadcast %263 : vector<1x64xf32> to vector<16x64xf32>
    %285 = arith.mulf %283, %284 : vector<16x64xf32>
    %286 = vector.broadcast %265 : vector<1x64xf32> to vector<16x64xf32>
    %287 = arith.addf %285, %286 : vector<16x64xf32>
    %c1_105 = arith.constant 1 : index
    %c0_106 = arith.constant 0 : index
    %c0_107 = arith.constant 0 : index
    %288 = vector.load %arg11[%c1_105, %c0_106, %c0_107] : memref<2x64x256xbf16, #tpu.memory_space<vmem>>, vector<1x64x256xbf16>
    %289 = vector.shape_cast %288 : vector<1x64x256xbf16> to vector<64x256xbf16>
    %c1_108 = arith.constant 1 : index
    %c0_109 = arith.constant 0 : index
    %c0_110 = arith.constant 0 : index
    %290 = vector.load %arg12[%c1_108, %c0_109, %c0_110] : memref<2x1x256xf32, #tpu.memory_space<vmem>>, vector<1x1x256xf32>
    %291 = vector.shape_cast %290 : vector<1x1x256xf32> to vector<1x256xf32>
    %292 = arith.truncf %287 : vector<16x64xf32> to vector<16x64xbf16>
    %cst_111 = arith.constant dense<0.000000e+00> : vector<16x256xf32>
    %293 = tpu.matmul %292, %289, %cst_111 {dimension_numbers = #tpu.dot_dimension_numbers<[1], [0], [0], [1], [0, 0, 1, 1], [], []>} : vector<16x64xbf16>, vector<64x256xbf16>, vector<16x256xf32> -> vector<16x256xf32>
    %294 = vector.broadcast %291 : vector<1x256xf32> to vector<16x256xf32>
    %295 = arith.addf %293, %294 : vector<16x256xf32>
    %296 = arith.mulf %295, %295 : vector<16x256xf32>
    %297 = arith.mulf %295, %296 : vector<16x256xf32>
    %cst_112 = arith.constant 4.471500e-02 : f32
    %298 = vector.broadcast %cst_112 : f32 to vector<16x256xf32>
    %299 = arith.mulf %298, %297 : vector<16x256xf32>
    %300 = arith.addf %295, %299 : vector<16x256xf32>
    %cst_113 = arith.constant 0.797884583 : f32
    %301 = vector.broadcast %cst_113 : f32 to vector<16x256xf32>
    %302 = arith.mulf %301, %300 : vector<16x256xf32>
    %303 = math.tanh %302 : vector<16x256xf32>
    %cst_114 = arith.constant 1.000000e+00 : f32
    %304 = vector.broadcast %cst_114 : f32 to vector<16x256xf32>
    %305 = arith.addf %304, %303 : vector<16x256xf32>
    %cst_115 = arith.constant 5.000000e-01 : f32
    %306 = vector.broadcast %cst_115 : f32 to vector<16x256xf32>
    %307 = arith.mulf %306, %305 : vector<16x256xf32>
    %308 = arith.mulf %295, %307 : vector<16x256xf32>
    %c1_116 = arith.constant 1 : index
    %c0_117 = arith.constant 0 : index
    %c0_118 = arith.constant 0 : index
    %309 = vector.load %arg13[%c1_116, %c0_117, %c0_118] : memref<2x256x64xbf16, #tpu.memory_space<vmem>>, vector<1x256x64xbf16>
    %310 = vector.shape_cast %309 : vector<1x256x64xbf16> to vector<256x64xbf16>
    %c1_119 = arith.constant 1 : index
    %c0_120 = arith.constant 0 : index
    %c0_121 = arith.constant 0 : index
    %311 = vector.load %arg14[%c1_119, %c0_120, %c0_121] : memref<2x1x64xf32, #tpu.memory_space<vmem>>, vector<1x1x64xf32>
    %312 = vector.shape_cast %311 : vector<1x1x64xf32> to vector<1x64xf32>
    %313 = arith.truncf %308 : vector<16x256xf32> to vector<16x256xbf16>
    %cst_122 = arith.constant dense<0.000000e+00> : vector<16x64xf32>
    %314 = tpu.matmul %313, %310, %cst_122 {dimension_numbers = #tpu.dot_dimension_numbers<[1], [0], [0], [1], [0, 0, 1, 1], [], []>} : vector<16x256xbf16>, vector<256x64xbf16>, vector<16x64xf32> -> vector<16x64xf32>
    %315 = vector.broadcast %312 : vector<1x64xf32> to vector<16x64xf32>
    %316 = arith.addf %314, %315 : vector<16x64xf32>
    %317 = arith.addf %261, %316 : vector<16x64xf32>
    %318 = vector.extract_strided_slice %317 {offsets = [0, 0], sizes = [1, 64], strides = [1, 1]} : vector<16x64xf32> to vector<1x64xf32>
    %319 = vector.extract_strided_slice %317 {offsets = [8, 0], sizes = [1, 64], strides = [1, 1]} : vector<16x64xf32> to vector<1x64xf32>
    %320 = tpu.concatenate %318, %319 in 0 : vector<1x64xf32>, vector<1x64xf32> -> vector<2x64xf32>
    %c0_123 = arith.constant 0 : index
    %c0_124 = arith.constant 0 : index
    %321 = vector.load %arg15[%c0_123, %c0_124] : memref<1x64xf32, #tpu.memory_space<vmem>>, vector<1x64xf32>
    %c0_125 = arith.constant 0 : index
    %c0_126 = arith.constant 0 : index
    %322 = vector.load %arg16[%c0_125, %c0_126] : memref<1x64xf32, #tpu.memory_space<vmem>>, vector<1x64xf32>
    %cst_127 = arith.constant dense<0.000000e+00> : vector<2xf32>
    %323 = vector.multi_reduction <add>, %320, %cst_127 [1] : vector<2x64xf32> to vector<2xf32>
    %324 = vector.shape_cast %323 : vector<2xf32> to vector<2x1xf32>
    %cst_128 = arith.constant 6.400000e+01 : f32
    %325 = vector.broadcast %cst_128 : f32 to vector<2x1xf32>
    %326 = arith.divf %324, %325 : vector<2x1xf32>
    %327 = vector.broadcast %326 : vector<2x1xf32> to vector<2x64xf32>
    %328 = arith.subf %320, %327 : vector<2x64xf32>
    %329 = arith.mulf %328, %328 : vector<2x64xf32>
    %cst_129 = arith.constant dense<0.000000e+00> : vector<2xf32>
    %330 = vector.multi_reduction <add>, %329, %cst_129 [1] : vector<2x64xf32> to vector<2xf32>
    %331 = vector.shape_cast %330 : vector<2xf32> to vector<2x1xf32>
    %cst_130 = arith.constant 6.400000e+01 : f32
    %332 = vector.broadcast %cst_130 : f32 to vector<2x1xf32>
    %333 = arith.divf %331, %332 : vector<2x1xf32>
    %334 = vector.broadcast %326 : vector<2x1xf32> to vector<2x64xf32>
    %335 = arith.subf %320, %334 : vector<2x64xf32>
    %cst_131 = arith.constant 9.99999996E-13 : f32
    %336 = vector.broadcast %cst_131 : f32 to vector<2x1xf32>
    %337 = arith.addf %333, %336 : vector<2x1xf32>
    %338 = math.rsqrt %337 : vector<2x1xf32>
    %339 = vector.broadcast %338 : vector<2x1xf32> to vector<2x64xf32>
    %340 = arith.mulf %335, %339 : vector<2x64xf32>
    %341 = vector.broadcast %321 : vector<1x64xf32> to vector<2x64xf32>
    %342 = arith.mulf %340, %341 : vector<2x64xf32>
    %343 = vector.broadcast %322 : vector<1x64xf32> to vector<2x64xf32>
    %344 = arith.addf %342, %343 : vector<2x64xf32>
    %c0_132 = arith.constant 0 : index
    %c0_133 = arith.constant 0 : index
    %345 = vector.load %arg17[%c0_132, %c0_133] : memref<64x32xbf16, #tpu.memory_space<vmem>>, vector<64x32xbf16>
    %c0_134 = arith.constant 0 : index
    %c0_135 = arith.constant 0 : index
    %346 = vector.load %arg18[%c0_134, %c0_135] : memref<1x32xf32, #tpu.memory_space<vmem>>, vector<1x32xf32>
    %347 = arith.truncf %344 : vector<2x64xf32> to vector<2x64xbf16>
    %cst_136 = arith.constant dense<0.000000e+00> : vector<2x32xf32>
    %348 = tpu.matmul %347, %345, %cst_136 {dimension_numbers = #tpu.dot_dimension_numbers<[1], [0], [0], [1], [0, 0, 1, 1], [], []>} : vector<2x64xbf16>, vector<64x32xbf16>, vector<2x32xf32> -> vector<2x32xf32>
    %349 = vector.broadcast %346 : vector<1x32xf32> to vector<2x32xf32>
    %350 = arith.addf %348, %349 : vector<2x32xf32>
    %c0_137 = arith.constant 0 : index
    %c0_138 = arith.constant 0 : index
    %351 = vector.load %arg19[%c0_137, %c0_138] : memref<2x32xf32, #tpu.memory_space<vmem>>, vector<2x32xf32>
    tpu.vector_store %arg19[%c0_137, %c0_138], %350 {strides = array<i32>} : memref<2x32xf32, #tpu.memory_space<vmem>>, vector<2x32xf32>,
    return
  }
}

</mosaic_0001>

<bundles_post_ra>
// kernel: encoder_forward.1
= control target key start
LH: loop header
LB: loop body
LE: loop exit
PB: predicated region body
PF: predicated region fallthrough
CT: control target
= control target key end

     0   :  { %s5257_s0 = inlined_call_operand.vmem [shape: f32[16,192], index: 0, kind: input, shape index: {}]   ;;  %s5258_s1 = inlined_call_operand.vmem [shape: bf16[192,64], index: 1, kind: input, shape index: {}]   ;;  %s5259_s2 = inlined_call_operand.vmem [shape: f32[8,64], index: 2, kind: input, shape index: {}]   ;;  %s5260_s3 = inlined_call_operand.vmem [shape: f32[2,1,64], index: 3, kind: input, shape index: {}]   ;;  %s5261_s4 = inlined_call_operand.vmem [shape: f32[2,1,64], index: 4, kind: input, shape index: {}]   ;;  %s5262_s5 = inlined_call_operand.vmem [shape: bf16[2,64,192], index: 5, kind: input, shape index: {}]   ;;  %s5263_s6 = inlined_call_operand.vmem [shape: f32[2,1,192], index: 6, kind: input, shape index: {}]   ;;  %s5264_s7 = inlined_call_operand.vmem [shape: bf16[2,64,64], index: 7, kind: input, shape index: {}]   ;;  %s5265_s8 = inlined_call_operand.vmem [shape: f32[2,1,64], index: 8, kind: input, shape index: {}]   ;;  %s5266_s9 = inlined_call_operand.vmem [shape: f32[2,1,64], index: 9, kind: input, shape index: {}]   ;;  %s5267_s10 = inlined_call_operand.vmem [shape: f32[2,1,64], index: 10, kind: input, shape index: {}]   ;;  %s5268_s11 = inlined_call_operand.vmem [shape: bf16[2,64,256], index: 11, kind: input, shape index: {}]   ;;  %s5269_s12 = inlined_call_operand.vmem [shape: f32[2,1,256], index: 12, kind: input, shape index: {}]   ;;  %s5270_s13 = inlined_call_operand.vmem [shape: bf16[2,256,64], index: 13, kind: input, shape index: {}]   ;;  %s5271_s14 = inlined_call_operand.vmem [shape: f32[2,1,64], index: 14, kind: input, shape index: {}]   ;;  %s5272_s15 = inlined_call_operand.vmem [shape: f32[1,64], index: 15, kind: input, shape index: {}]   ;;  %s5273_s16 = inlined_call_operand.vmem [shape: f32[1,64], index: 16, kind: input, shape index: {}]   ;;  %s5274_s17 = inlined_call_operand.vmem [shape: bf16[64,32], index: 17, kind: input, shape index: {}]   ;;  %s5275_s18 = inlined_call_operand.vmem [shape: f32[1,32], index: 18, kind: input, shape index: {}]   ;;  %s5276_s19 = inlined_call_operand.hbm [shape: f32[2,32], index: 19, kind: output, shape index: {}]  }
   0x1   :  { %5283 = sst [smem:[#allocation5_spill]] %s5257_s0 }
   0x2   :  { %5284 = sst [smem:[#allocation6_spill]] %s5258_s1 }
   0x3   :  { %5285 = sst [smem:[#allocation7_spill]] %s5259_s2 }
   0x4   :  { %5286 = sst [smem:[#allocation8_spill]] %s5260_s3 }
   0x5   :  { %s5287_s20 = sld [smem:[#allocation6_spill]]  ;;  %v4298_v1 = vmov 0   ;;  %s5288_s26 = sld [smem:[#allocation5_spill]]  ;;  %vm166_vm0 = vcmask 523264  }
   0x6   :  { %170 = vmatprep.subr.bf16.mxu0 %v4298_v1  ;;  %355 = vmatprep.mubr.bf16.mxu1 %v4298_v1 }
   0xb   :  { %v4072_v0 = vld [vmem:[%s5287_s20] sm:$0xff]   ;;  %v4073_v2 = vld [vmem:[%s5287_s20 + $0x8] sm:$0xff]   ;;  %v4074_v3 = vld [vmem:[%s5287_s20 + $0x10] sm:$0xff]  }
   0xc   :  { %171 = vmatpush1.bf16.msra.mxu0 %v4072_v0  ;;  %v4075_v4 = vld [vmem:[%s5287_s20 + $0x18] sm:$0xff]   ;;  %v65_v5 = vld [vmem:[%s5288_s26 + $0x8] sm:$0xff]  ;;  %v4076_v7 = vld [vmem:[%s5287_s20 + $0x20] sm:$0xff]  }
   0xd   :  { %172 = vmatprep.subr.bf16.mxu0 %v4298_v1  ;;  %v67_v6 = vld [vmem:[%s5288_s26 + $0x18] sm:$0xff]  ;;  %v4077_v9 = vld [vmem:[%s5287_s20 + $0x28] sm:$0xff]   ;;  %v4078_v10 = vld [vmem:[%s5287_s20 + $0x30] sm:$0xff]  }
   0xe   :  { %v69_v8 = vpack.c.bf16 %v67_v6, %v65_v5  ;;  %v4079_v11 = vld [vmem:[%s5287_s20 + $0x38] sm:$0xff]   ;;  %v4080_v12 = vld [vmem:[%s5287_s20 + $0x40] sm:$0xff]   ;;  %v4081_v13 = vld [vmem:[%s5287_s20 + $0x48] sm:$0xff]  }
   0xf   :  { %v4082_v14 = vld [vmem:[%s5287_s20 + $0x50] sm:$0xff]   ;;  %v4083_v15 = vld [vmem:[%s5287_s20 + $0x58] sm:$0xff]   ;;  %v64_v16 = vld [vmem:[%s5288_s26] sm:$0xff] }
  0x10   :  { %173 = vmatpush1.bf16.msra.mxu0 %v4073_v2  ;;  %3457 = vmatprep.mubr.msk.bf16.mxu0 %vm166_vm0, %v69_v8  ;;  %v66_v17 = vld [vmem:[%s5288_s26 + $0x10] sm:$0xff] }
  0x11   :  { %174 = vmatprep.subr.bf16.mxu0 %v4298_v1  ;;  %v68_v18 = vpack.c.bf16 %v66_v17, %v64_v16 }
  0x14   :  { %175 = vmatpush1.bf16.msra.mxu0 %v4074_v3 }
  0x15   :  { %176 = vmatprep.subr.bf16.mxu0 %v4298_v1 }
  0x18   :  { %177 = vmatpush1.bf16.msra.mxu0 %v4075_v4 }
  0x19   :  { %178 = vmatprep.subr.bf16.mxu0 %v4298_v1 }
  0x1c   :  { %179 = vmatpush1.bf16.msra.mxu0 %v4076_v7 }
  0x1d   :  { %180 = vmatprep.subr.bf16.mxu0 %v4298_v1 }
  0x20   :  { %181 = vmatpush1.bf16.msra.mxu0 %v4077_v9 }
  0x21   :  { %182 = vmatprep.subr.bf16.mxu0 %v4298_v1 }
  0x24   :  { %183 = vmatpush1.bf16.msra.mxu0 %v4078_v10 }
  0x25   :  { %184 = vmatprep.subr.bf16.mxu0 %v4298_v1 }
  0x28   :  { %185 = vmatpush1.bf16.msra.mxu0 %v4079_v11 }
  0x29   :  { %186 = vmatprep.subr.bf16.mxu0 %v4298_v1 }
  0x2c   :  { %187 = vmatpush1.bf16.msra.mxu0 %v4080_v12 }
  0x2d   :  { %188 = vmatprep.subr.bf16.mxu0 %v4298_v1 }
  0x30   :  { %189 = vmatpush1.bf16.msra.mxu0 %v4081_v13 }
  0x31   :  { %190 = vmatprep.subr.bf16.mxu0 %v4298_v1 }
  0x34   :  { %191 = vmatpush1.bf16.msra.mxu0 %v4082_v14 }
  0x35   :  { %192 = vmatprep.subr.bf16.mxu0 %v4298_v1 }
  0x38   :  { %193 = vmatpush1.bf16.msra.mxu0 %v4083_v15 }
  0x3b   :  { %203 = vmatmul.mubr.bf16.vlgmr.msra.gmra.mrb[0].mxu0 %v68_v18 }
  0x3c   :  { %24 = vsyncpa [#allocation3], 0  ;;  %s5289_s25 = sld [smem:[#allocation7_spill]]  ;;  %v4084_v38 = vld [vmem:[%s5262_s5 + $0x4] ss:$8 sps:$4 sm:$0xff]   ;;  %s5290_s27 = sld [smem:[#allocation8_spill]]  ;;  %v270_v63 = vlaneseq }
  0x3d   :  { %v4086_v39 = vld [vmem:[%s5262_s5] ss:$8 sps:$4 sm:$0xff]   ;;  %323 = vmatprep.subr.bf16.mxu1 %v4084_v38  ;;  %v4087_v40 = vld [vmem:[%s5262_s5 + $0x14] ss:$8 sps:$4 sm:$0xff]   ;;  %v4089_v41 = vld [vmem:[%s5262_s5 + $0x10] ss:$8 sps:$4 sm:$0xff]  }
  0x3e   :  { %324 = vmatpush1.bf16.msra.mxu1 %v4086_v39  ;;  %v4090_v42 = vld [vmem:[%s5262_s5 + $0x24] ss:$8 sps:$4 sm:$0xff]   ;;  %v4092_v43 = vld [vmem:[%s5262_s5 + $0x20] ss:$8 sps:$4 sm:$0xff]   ;;  %v4093_v44 = vld [vmem:[%s5262_s5 + $0x34] ss:$8 sps:$4 sm:$0xff]  }
  0x3f   :  { %325 = vmatprep.subr.bf16.mxu1 %v4087_v40  ;;  %v4095_v45 = vld [vmem:[%s5262_s5 + $0x30] ss:$8 sps:$4 sm:$0xff]   ;;  %v3459_v58 = vld [vmem:[%s5261_s4] ss:$0 sm:$0xff]  ;;  %v4518_v0 = vshrl.u32 %v270_v63, 7  ;;  %v4299_v6 = vmov 0.0  }
  0x40   :  { %v4526_v3 = vld [vmem:[%s5263_s6] sm:$0x3]  ;;  %3839 = vmatprep.subr.bf16.mxu0 %v4299_v6  ;;  %s4300_s21 = smov 112   ;;  %vm4301_vm1 = vmmov 0   ;;  %s4302_s1 = smov 80   ;;  %vm404_vm2 = vcmask 130048  }
  0x41   :  { %v4521_v2 = vsub.s32 0, %v4518_v0  ;;  %3841 = vmatprep.mubr.msk.bf16.mxu0 %vm4301_vm1, %v4299_v6  ;;  %s4303_s22 = smov 96   ;;  %s4304_s2 = smov 64   ;;  %vm910_vm3 = vcmask 1043456   ;;  %vm810_vm5 = vcmask 64512   ;;  %vm1302_vm6 = vcmask 261120  }
  0x42   :  { %v211_v19 = vld [vmem:[%s5289_s25] sm:$0xff]  ;;  %326 = vmatpush1.bf16.msra.mxu1 %v4089_v41  ;;  %s5282_s25 = smov 16   ;;  %s5281_s30 = smov 32   ;;  %vm1305_vm7 = vcmask 392192   ;;  %vm3314_vm8 = vcmask 1040384   ;;  %vm3318_vm9 = vcmask 517120  }
  0x43   :  { %327 = vmatprep.subr.bf16.mxu1 %v4090_v42  ;;  %v3458_v54 = vld [vmem:[%s5290_s27] ss:$0 sm:$0xff]  ;;  %v273_v4 = vrot.slane %v4526_v3, %v4521_v2  ;;  %s5280_s23 = smov 48   ;;  %s5292_s20 = smov 32   ;;  %vm3429_vm10 = vcmask 254976  }
  0x44   :  { %s4308_s3 = smov [#allocation2]  }
  0x46   :  { %328 = vmatpush1.bf16.msra.mxu1 %v4092_v43 }
  0x47   :  { %329 = vmatprep.subr.bf16.mxu1 %v4093_v44 }
  0x4a   :  { %330 = vmatpush1.bf16.msra.mxu1 %v4095_v45 }
  0x4b   :  { %3803 = vmatprep.subr.bf16.mxu1 %v4299_v6 }
 0x10e   :  { %v204_v20 = vpop.f32.mrb[0].mxu0 }
 0x10f   :  { %v4474_v21 = vadd.f32 %v211_v19, %v204_v20  ;;  %v206_v22 = vpop.f32.mrb[1].mxu0 }
 0x110   :  { %v207_v23 = vpop.f32.mrb[2].mxu0 }
 0x111   :  { %v4476_v24 = vadd.f32 %v211_v19, %v207_v23  ;;  %v209_v25 = vpop.f32.mrb[3].mxu0  ;;  %v216_v26 = vsel %vm166_vm0, %v4474_v21, 0.0 }
 0x112   :  { %217 = vadd.xlane.f32.xlu0 %v216_v26 }
 0x113   :  { %v219_v27 = vsel %vm166_vm0, %v4476_v24, 0.0 }
 0x116   :  { %220 = vadd.xlane.f32.xlu0 %v219_v27 }
 0x19f   :  { %v218_v28 = vpop.xlane.xlu0 %217 }
 0x1a0   :  { %v223_v29 = vmul.f32 0.015625, %v218_v28 }
 0x1a2   :  { %v225_v30 = vsub.f32 %v4474_v21, %v223_v29 }
 0x1a3   :  { %v221_v31 = vpop.xlane.xlu0 %220 }
 0x1a4   :  { %v224_v32 = vmul.f32 0.015625, %v221_v31  ;;  %v227_v33 = vmul.f32 %v225_v30, %v225_v30 }
 0x1a6   :  { %v226_v34 = vsub.f32 %v4476_v24, %v224_v32  ;;  %v229_v35 = vsel %vm166_vm0, %v227_v33, 0.0 }
 0x1a7   :  { %230 = vadd.xlane.f32.xlu1 %v229_v35 }
 0x1a8   :  { %v228_v36 = vmul.f32 %v226_v34, %v226_v34 }
 0x1aa   :  { %v232_v37 = vsel %vm166_vm0, %v228_v36, 0.0 }
 0x1ab   :  { %233 = vadd.xlane.f32.xlu1 %v232_v37 }
 0x234   :  { %v231_v46 = vpop.xlane.xlu1 %230 }
 0x235   :  { %v235_v47 = vmul.f32 0.015625, %v231_v46 }
 0x237   :  { %v237_v48 = vadd.f32 1e-12, %v235_v47 }
 0x238   :  { %v234_v49 = vpop.xlane.xlu1 %233 }
 0x239   :  { %4176 = vrsqrt.f32 %v237_v48  ;;  %v236_v50 = vmul.f32 0.015625, %v234_v49 }
 0x23b   :  { %v238_v51 = vadd.f32 1e-12, %v236_v50 }
 0x23d   :  { %4178 = vrsqrt.f32 %v238_v51 }
 0x243   :  { %v4177_v52 = vpop.eup %4176 }
 0x244   :  { %v241_v53 = vmul.f32 %v4177_v52, %v225_v30  ;;  %v4612_v52 = vand.u32 127, %v270_v63 }
 0x246   :  { %v249_v57 = vmul.f32 %v3458_v54, %v241_v53  ;;  %vm801_vm4 = vcmp.lt.s32.totalorder %v4612_v52, 5 }
 0x247   :  { %v4179_v55 = vpop.eup %4178 }
 0x248   :  { %v242_v56 = vmul.f32 %v4179_v55, %v226_v34  ;;  %v257_v60 = vadd.f32 %v3459_v58, %v249_v57  ;;  %v4566_v34 = vsub.s32 1, %v4518_v0 }
 0x24a   :  { %v250_v59 = vmul.f32 %v3458_v54, %v242_v56  ;;  %v277_v37 = vrot.slane %v4526_v3, %v4566_v34 }
 0x24c   :  { %v258_v61 = vadd.f32 %v3459_v58, %v250_v59 }
 0x24e   :  { %v268_v62 = vpack.c.bf16 %v258_v61, %v257_v60 }
 0x250   :  { %3468 = vmatmul.mubr.msk.bf16.vlgmr.msra.gmra.mrb[0].mxu1 %vm166_vm0, %v268_v62 }
 0x251   :  { %3805 = vmatprep.mubr.msk.bf16.mxu1 %vm4301_vm1, %v4299_v6 }
 0x323   :  { %v357_v5 = vpop.f32.mrb[0].mxu1 }
 0x324   :  { %v358_v7 = vadd.f32 %v357_v5, %v273_v4  ;;  %v4532_v8 = vpop.f32.mrb[1].mxu1 }
 0x325   :  { %v361_v9 = vpop.f32.mrb[2].mxu1  ;;  %v360_v40 = vadd.f32 %v4532_v8, %v277_v37 }
 0x326   :  { %v3672_v10 = vpack.c.bf16 %v358_v7, %v358_v7  ;;  %v362_v11 = vadd.f32 %v361_v9, %v273_v4  ;;  %v4534_v12 = vpop.f32.mrb[3].mxu1 }
 0x327   :  { %v4579_v42 = vpack.c.bf16 %v360_v40, %v360_v40  ;;  %v364_v48 = vadd.f32 %v4534_v12, %v277_v37 }
 0x328   :  { %v3673_v13 = vpack.c.bf16 %v362_v11, %v362_v11  ;;  %373 = vrot.lane.b32.xlu0 %v3672_v10, %s4300_s21 }
 0x329   :  { %v912_v44 = vsel %vm910_vm3, %v4579_v42, 0  ;;  %v4603_v50 = vpack.c.bf16 %v364_v48, %v364_v48 }
 0x32a   :  { %375 = vrot.lane.b32.xlu1 %v3673_v13, %s4300_s21 }
 0x32b   :  { %v958_v51 = vsel %vm910_vm3, %v4603_v50, 0 }
 0x32c   :  { %381 = vrot.lane.b32.xlu0 %v3672_v10, %s4302_s1 }
 0x32e   :  { %377 = vrot.lane.b32.xlu1 %v3672_v10, %s4303_s22 }
 0x330   :  { %402 = vrot.lane.b32.xlu0 %v3672_v10, %s4304_s2 }
 0x332   :  { %379 = vrot.lane.b32.xlu1 %v3673_v13, %s4303_s22 }
 0x336   :  { %383 = vrot.lane.b32.xlu1 %v3673_v13, %s4302_s1 }
 0x33a   :  { %451 = vrot.lane.b32.xlu1 %v3673_v13, %s4304_s2 }
 0x39a   :  { %v374_v14 = vpop.permute.xlu0 %373 }
 0x39b   :  { %v3475_v15 = vcombine.low %v374_v14, %v374_v14 }
 0x39c   :  { %v376_v16 = vpop.permute.xlu1 %375 }
 0x39d   :  { %v3477_v17 = vcombine.low %v376_v16, %v376_v16  ;;  %501 = vrot.lane.b32.xlu0 %v3475_v15, %s4304_s2 }
 0x39e   :  { %v382_v18 = vpop.permute.xlu0 %381 }
 0x39f   :  { %551 = vrot.lane.b32.xlu1 %v3477_v17, %s4304_s2  ;;  %v3483_v26 = vcombine.low %v382_v18, %v382_v18 }
 0x3a0   :  { %v378_v19 = vpop.permute.xlu1 %377 }
 0x3a1   :  { %v3479_v20 = vcombine.low %v378_v19, %v378_v19 }
 0x3a2   :  { %v403_v22 = vpop.permute.xlu0 %402 }
 0x3a3   :  { %v409_v23 = vsel %vm404_vm2, %v403_v22, 0  ;;  %601 = vrot.lane.b32.xlu0 %v3479_v20, %s4304_s2 }
 0x3a4   :  { %v380_v25 = vpop.permute.xlu1 %379  ;;  %3804 = vmatpush3.bf16.xpose.msra.mxu1 %v409_v23 }
 0x3a5   :  { %v3481_v27 = vcombine.low %v380_v25, %v380_v25  ;;  %3809 = vmatprep.subr.bf16.mxu1 %v4299_v6 }
 0x3a7   :  { %651 = vrot.lane.b32.xlu1 %v3481_v27, %s4304_s2  ;;  %701 = vrot.lane.b32.xlu0 %v3483_v26, %s4304_s2 }
 0x3a8   :  { %v384_v28 = vpop.permute.xlu1 %383 }
 0x3a9   :  { %v3485_v29 = vcombine.low %v384_v28, %v384_v28 }
 0x3ab   :  { %751 = vrot.lane.b32.xlu1 %v3485_v29, %s4304_s2  ;;  %3806 = vmatmul.mubr.msk.bf16.vlgmr.msra.gmra.mrb[4].mxu1 %vm404_vm2, %v3672_v10 }
 0x3ac   :  { %v452_v30 = vpop.permute.xlu1 %451  ;;  %3811 = vmatprep.mubr.msk.bf16.mxu1 %vm4301_vm1, %v4299_v6 }
 0x3ad   :  { %v457_v31 = vsel %vm404_vm2, %v452_v30, 0 }
 0x3ae   :  { %3810 = vmatpush3.bf16.xpose.msra.mxu1 %v457_v31 }
 0x3af   :  { %3815 = vmatprep.subr.bf16.mxu1 %v4299_v6 }
 0x3b5   :  { %3812 = vmatmul.mubr.msk.bf16.vlgmr.msra.gmra.mrb[8].mxu1 %vm404_vm2, %v3673_v13 }
 0x3b6   :  { %3817 = vmatprep.mubr.msk.bf16.mxu1 %vm4301_vm1, %v4299_v6 }
 0x40f   :  { %v502_v32 = vpop.permute.xlu0 %501 }
 0x410   :  { %v507_v33 = vsel %vm404_vm2, %v502_v32, 0 }
 0x411   :  { %3816 = vmatpush3.bf16.xpose.msra.mxu1 %v507_v33  ;;  %v552_v35 = vpop.permute.xlu1 %551 }
 0x412   :  { %3821 = vmatprep.subr.bf16.mxu1 %v4299_v6  ;;  %v557_v38 = vsel %vm404_vm2, %v552_v35, 0 }
 0x415   :  { %v602_v36 = vpop.permute.xlu0 %601 }
 0x416   :  { %v607_v43 = vsel %vm404_vm2, %v602_v36, 0 }
 0x418   :  { %3818 = vmatmul.mubr.msk.bf16.vlgmr.msra.gmra.mrb[12].mxu1 %vm404_vm2, %v374_v14 }
 0x419   :  { %3822 = vmatpush3.bf16.xpose.msra.mxu1 %v557_v38  ;;  %v702_v39 = vpop.permute.xlu0 %701  ;;  %3823 = vmatprep.mubr.msk.bf16.mxu1 %vm4301_vm1, %v4299_v6  ;;  %v652_v45 = vpop.permute.xlu1 %651 }
 0x41a   :  { %v707_v41 = vsel %vm404_vm2, %v702_v39, 0  ;;  %3827 = vmatprep.subr.bf16.mxu1 %v4299_v6  ;;  %v657_v46 = vsel %vm404_vm2, %v652_v45, 0 }
 0x41b   :  { %3840 = vmatpush3.bf16.xpose.msra.mxu0 %v707_v41 }
 0x41c   :  { %3851 = vmatprep.subr.bf16.mxu0 %v4299_v6 }
 0x41d   :  { %v752_v47 = vpop.permute.xlu1 %751 }
 0x41e   :  { %v757_v49 = vsel %vm404_vm2, %v752_v47, 0 }
 0x420   :  { %3824 = vmatmul.mubr.msk.bf16.vlgmr.msra.gmra.mrb[16].mxu1 %vm404_vm2, %v376_v16 }
 0x421   :  { %3828 = vmatpush3.bf16.xpose.msra.mxu1 %v607_v43  ;;  %3829 = vmatprep.mubr.msk.bf16.mxu1 %vm4301_vm1, %v4299_v6 }
 0x422   :  { %3842 = vmatmul.mubr.msk.bf16.vlgmr.msra.gmra.mrb[4].mxu0 %vm404_vm2, %v382_v18  ;;  %3833 = vmatprep.subr.bf16.mxu1 %v4299_v6 }
 0x423   :  { %3852 = vmatpush3.bf16.msra.mxu0 %v912_v44  ;;  %3853 = vmatprep.mubr.msk.bf16.mxu0 %vm4301_vm1, %v4299_v6 }
 0x424   :  { %3863 = vmatprep.subr.bf16.mxu0 %v4299_v6 }
 0x428   :  { %3830 = vmatmul.mubr.msk.bf16.vlgmr.msra.gmra.mrb[20].mxu1 %vm404_vm2, %v378_v19 }
 0x429   :  { %3834 = vmatpush3.bf16.xpose.msra.mxu1 %v657_v46  ;;  %3835 = vmatprep.mubr.msk.bf16.mxu1 %vm4301_vm1, %v4299_v6 }
 0x42a   :  { %3845 = vmatprep.subr.bf16.mxu1 %v4299_v6 }
 0x430   :  { %3836 = vmatmul.mubr.msk.bf16.vlgmr.msra.gmra.mrb[24].mxu1 %vm404_vm2, %v380_v25 }
 0x431   :  { %3846 = vmatpush3.bf16.xpose.msra.mxu1 %v757_v49  ;;  %3847 = vmatprep.mubr.msk.bf16.mxu1 %vm4301_vm1, %v4299_v6 }
 0x432   :  { %3857 = vmatprep.subr.bf16.mxu1 %v4299_v6 }
 0x438   :  { %3848 = vmatmul.mubr.msk.bf16.vlgmr.msra.gmra.mrb[28].mxu1 %vm404_vm2, %v384_v28 }
 0x439   :  { %3858 = vmatpush3.bf16.msra.mxu1 %v958_v51  ;;  %3859 = vmatprep.mubr.msk.bf16.mxu1 %vm4301_vm1, %v4299_v6 }
 0x43a   :  { %3869 = vmatprep.subr.bf16.mxu1 %v4299_v6 }
 0x47e   :  { %v445_v53 = vpop.f32.mrb[4].mxu1 }
 0x47f   :  { %v802_v54 = vsel %vm801_vm4, %v445_v53, -1e+30  ;;  %v3807_v55 = vpop.f32.mrb[5].mxu1 }
 0x480   :  { %v448_v56 = vpop.f32.mrb[6].mxu1  ;;  %v811_v57 = vsel %vm810_vm5, %v802_v54, -inf }
 0x481   :  { %812 = vmax.xlane.f32.xlu0 %v811_v57  ;;  %v3808_v58 = vpop.f32.mrb[7].mxu1 }
 0x488   :  { %v493_v59 = vpop.f32.mrb[8].mxu1 }
 0x489   :  { %v803_v60 = vsel %vm801_vm4, %v493_v59, -1e+30  ;;  %v3813_v61 = vpop.f32.mrb[9].mxu1 }
 0x48a   :  { %v496_v62 = vpop.f32.mrb[10].mxu1  ;;  %v814_v63 = vsel %vm810_vm5, %v803_v60, -inf }
 0x48b   :  { %815 = vmax.xlane.f32.xlu1 %v814_v63  ;;  %v3814_v0 = vpop.f32.mrb[11].mxu1 }
 0x4eb   :  { %v543_v3 = vpop.f32.mrb[12].mxu1 }
 0x4ec   :  { %v804_v4 = vsel %vm801_vm4, %v543_v3, -1e+30  ;;  %v3819_v5 = vpop.f32.mrb[13].mxu1 }
 0x4ed   :  { %v546_v7 = vpop.f32.mrb[14].mxu1  ;;  %v817_v8 = vsel %vm810_vm5, %v804_v4, -inf }
 0x4ee   :  { %818 = vmax.xlane.f32.xlu0 %v817_v8  ;;  %v3820_v9 = vpop.f32.mrb[15].mxu1 }
 0x4f3   :  { %v593_v10 = vpop.f32.mrb[16].mxu1 }
 0x4f4   :  { %v805_v11 = vsel %vm801_vm4, %v593_v10, -1e+30  ;;  %v3825_v12 = vpop.f32.mrb[17].mxu1 }
 0x4f5   :  { %v596_v13 = vpop.f32.mrb[18].mxu1  ;;  %v743_v14 = vpop.f32.mrb[4].mxu0  ;;  %v820_v15 = vsel %vm810_vm5, %v805_v11, -inf }
 0x4f6   :  { %821 = vmax.xlane.f32.xlu0 %v820_v15  ;;  %v3826_v16 = vpop.f32.mrb[19].mxu1  ;;  %v3843_v17 = vpop.f32.mrb[5].mxu0  ;;  %v808_v27 = vsel %vm801_vm4, %v743_v14, -1e+30 }
 0x4f7   :  { %v746_v18 = vpop.f32.mrb[6].mxu0  ;;  %v829_v29 = vsel %vm810_vm5, %v808_v27, -inf }
 0x4f8   :  { %v3844_v19 = vpop.f32.mrb[7].mxu0 }
 0x4fb   :  { %v643_v20 = vpop.f32.mrb[20].mxu1 }
 0x4fc   :  { %v806_v22 = vsel %vm801_vm4, %v643_v20, -1e+30  ;;  %v3831_v23 = vpop.f32.mrb[21].mxu1 }
 0x4fd   :  { %v646_v25 = vpop.f32.mrb[22].mxu1  ;;  %v823_v26 = vsel %vm810_vm5, %v806_v22, -inf }
 0x4fe   :  { %824 = vmax.xlane.f32.xlu0 %v823_v26  ;;  %v3832_v28 = vpop.f32.mrb[23].mxu1 }
 0x502   :  { %830 = vmax.xlane.f32.xlu0 %v829_v29 }
 0x503   :  { %v693_v30 = vpop.f32.mrb[24].mxu1 }
 0x504   :  { %v4635_v31 = vsel %vm801_vm4, %v693_v30, -1e+30  ;;  %v3837_v32 = vpop.f32.mrb[25].mxu1 }
 0x505   :  { %v696_v33 = vpop.f32.mrb[26].mxu1  ;;  %v826_v35 = vsel %vm810_vm5, %v4635_v31, -inf }
 0x506   :  { %827 = vmax.xlane.f32.xlu1 %v826_v35  ;;  %v3838_v36 = vpop.f32.mrb[27].mxu1 }
 0x50b   :  { %v793_v37 = vpop.f32.mrb[28].mxu1 }
 0x50c   :  { %v4641_v38 = vsel %vm801_vm4, %v793_v37, -1e+30  ;;  %v3849_v39 = vpop.f32.mrb[29].mxu1 }
 0x50d   :  { %v796_v40 = vpop.f32.mrb[30].mxu1  ;;  %v832_v41 = vsel %vm810_vm5, %v4641_v38, -inf }
 0x50e   :  { %833 = vmax.xlane.f32.xlu1 %v832_v41  ;;  %v3850_v43 = vpop.f32.mrb[31].mxu1  ;;  %v813_v44 = vpop.xlane.xlu0 %812 }
 0x50f   :  { %v835_v45 = vsub.f32 %v802_v54, %v813_v44 }
 0x511   :  { %v843_v46 = vmul.f32 1.442695, %v835_v45 }
 0x513   :  { %4180 = vpow2.f32 %v843_v46 }
 0x518   :  { %v816_v47 = vpop.xlane.xlu1 %815 }
 0x519   :  { %v836_v48 = vsub.f32 %v803_v60, %v816_v47 }
 0x51b   :  { %v845_v49 = vmul.f32 1.442695, %v836_v48 }
 0x51d   :  { %v4181_v51 = vpop.eup %4180  ;;  %4182 = vpow2.f32 %v845_v49 }
 0x51e   :  { %v859_v53 = vsel %vm810_vm5, %v4181_v51, 0.0 }
 0x51f   :  { %860 = vadd.xlane.f32.xlu0 %v859_v53 }
 0x527   :  { %v4183_v55 = vpop.eup %4182 }
 0x528   :  { %v862_v56 = vsel %vm810_vm5, %v4183_v55, 0.0 }
 0x529   :  { %863 = vadd.xlane.f32.xlu1 %v862_v56 }
 0x57b   :  { %v819_v57 = vpop.xlane.xlu0 %818 }
 0x57c   :  { %v837_v58 = vsub.f32 %v804_v4, %v819_v57 }
 0x57e   :  { %v847_v59 = vmul.f32 1.442695, %v837_v58 }
 0x580   :  { %4184 = vpow2.f32 %v847_v59 }
 0x583   :  { %v822_v61 = vpop.xlane.xlu0 %821 }
 0x584   :  { %v838_v54 = vsub.f32 %v805_v11, %v822_v61 }
 0x586   :  { %v849_v62 = vmul.f32 1.442695, %v838_v54 }
 0x588   :  { %4186 = vpow2.f32 %v849_v62 }
 0x58a   :  { %v4647_v63 = vpop.eup %4184 }
 0x58b   :  { %v825_v60 = vpop.xlane.xlu0 %824  ;;  %v865_v0 = vsel %vm810_vm5, %v4647_v63, 0.0 }
 0x58c   :  { %866 = vadd.xlane.f32.xlu0 %v865_v0  ;;  %v839_v3 = vsub.f32 %v806_v22, %v825_v60 }
 0x58e   :  { %v851_v9 = vmul.f32 1.442695, %v839_v3 }
 0x58f   :  { %v831_v5 = vpop.xlane.xlu0 %830 }
 0x590   :  { %v841_v7 = vsub.f32 %v808_v27, %v831_v5 }
 0x592   :  { %v4187_v8 = vpop.eup %4186  ;;  %v855_v10 = vmul.f32 1.442695, %v841_v7 }
 0x593   :  { %v868_v4 = vsel %vm810_vm5, %v4187_v8, 0.0  ;;  %v828_v16 = vpop.xlane.xlu1 %827 }
 0x594   :  { %4188 = vpow2.f32 %v855_v10  ;;  %869 = vadd.xlane.f32.xlu1 %v868_v4  ;;  %v840_v23 = vsub.f32 %v4635_v31, %v828_v16 }
 0x595   :  { %4190 = vpow2.f32 %v851_v9 }
 0x596   :  { %v853_v25 = vmul.f32 1.442695, %v840_v23  ;;  %v4096_v23 = vld [vmem:[%s5264_s7] sm:$0xff]  }
 0x59b   :  { %v834_v17 = vpop.xlane.xlu1 %833 }
 0x59c   :  { %v842_v26 = vsub.f32 %v4641_v38, %v834_v17 }
 0x59e   :  { %v4652_v11 = vpop.eup %4188  ;;  %v857_v29 = vmul.f32 1.442695, %v842_v26 }
 0x59f   :  { %v877_v12 = vsel %vm810_vm5, %v4652_v11, 0.0  ;;  %v4656_v13 = vpop.eup %4190 }
 0x5a0   :  { %878 = vadd.xlane.f32.xlu0 %v877_v12  ;;  %v871_v14 = vsel %vm810_vm5, %v4656_v13, 0.0 }
 0x5a4   :  { %872 = vadd.xlane.f32.xlu0 %v871_v14 }
 0x5a5   :  { %392 = vrot.lane.b32.xlu1 %v4603_v50, %s4300_s21 }
 0x5a9   :  { %394 = vrot.lane.b32.xlu1 %v4579_v42, %s4303_s22 }
 0x5ac   :  { %v861_v15 = vpop.xlane.xlu0 %860 }
 0x5ad   :  { %4192 = vrcp.f32 %v861_v15  ;;  %396 = vrot.lane.b32.xlu1 %v4603_v50, %s4303_s22 }
 0x5b6   :  { %v864_v18 = vpop.xlane.xlu1 %863 }
 0x5b7   :  { %v4193_v19 = vpop.eup %4192  ;;  %4194 = vrcp.f32 %v864_v18 }
 0x5b8   :  { %v891_v20 = vmul.f32 %v4193_v19, %v4181_v51  ;;  %4196 = vpow2.f32 %v853_v25 }
 0x5b9   :  { %4198 = vpow2.f32 %v857_v29 }
 0x5ba   :  { %390 = vrot.lane.b32.xlu0 %v4579_v42, %s4300_s21  ;;  %v899_v22 = vpack.c.bf16 %v891_v20, %v891_v20 }
 0x5bc   :  { %3854 = vmatmul.mubr.msk.bf16.vlgmr.msra.gmra.mrb[8].mxu0 %vm810_vm5, %v899_v22 }
 0x5bd   :  { %3865 = vmatprep.mubr.msk.bf16.mxu0 %vm4301_vm1, %v4299_v6 }
 0x5be   :  { %398 = vrot.lane.b32.xlu0 %v4579_v42, %s4302_s1 }
 0x5c1   :  { %v4195_v27 = vpop.eup %4194 }
 0x5c2   :  { %v892_v28 = vmul.f32 %v4195_v27, %v4183_v55  ;;  %v4197_v31 = vpop.eup %4196 }
 0x5c3   :  { %v874_v32 = vsel %vm810_vm5, %v4197_v31, 0.0  ;;  %v4679_v33 = vpop.eup %4198 }
 0x5c4   :  { %v900_v30 = vpack.c.bf16 %v892_v28, %v892_v28  ;;  %v880_v42 = vsel %vm810_vm5, %v4679_v33, 0.0 }
 0x5c6   :  { %3860 = vmatmul.mubr.msk.bf16.vlgmr.msra.gmra.mrb[32].mxu1 %vm810_vm5, %v900_v30 }
 0x5c7   :  { %3871 = vmatprep.mubr.msk.bf16.mxu1 %vm4301_vm1, %v4299_v6 }
 0x5d1   :  { %875 = vadd.xlane.f32.xlu1 %v874_v32 }
 0x5d5   :  { %881 = vadd.xlane.f32.xlu1 %v880_v42 }
 0x5e6   :  { %400 = vrot.lane.b32.xlu1 %v4603_v50, %s4302_s1 }
 0x619   :  { %v867_v36 = vpop.xlane.xlu0 %866 }
 0x621   :  { %v870_v35 = vpop.xlane.xlu1 %869 }
 0x622   :  { %4200 = vrcp.f32 %v870_v35 }
 0x623   :  { %4202 = vrcp.f32 %v867_v36 }
 0x625   :  { %v393_v37 = vpop.permute.xlu1 %392 }
 0x626   :  { %v1050_v38 = vsel %vm910_vm3, %v393_v37, 0 }
 0x627   :  { %3870 = vmatpush3.bf16.msra.mxu1 %v1050_v38 }
 0x628   :  { %3881 = vmatprep.subr.bf16.mxu1 %v4299_v6 }
 0x629   :  { %v395_v39 = vpop.permute.xlu1 %394 }
 0x62a   :  { %v1096_v55 = vsel %vm910_vm3, %v395_v39, 0 }
 0x62c   :  { %v4201_v40 = vpop.eup %4200 }
 0x62d   :  { %v894_v41 = vmul.f32 %v4201_v40, %v4187_v8  ;;  %v879_v43 = vpop.xlane.xlu0 %878  ;;  %v397_v44 = vpop.permute.xlu1 %396  ;;  %v4097_v40 = vld [vmem:[%s5264_s7 + $0x8] sm:$0xff]  }
 0x62e   :  { %v4203_v46 = vpop.eup %4202  ;;  %v1142_v47 = vsel %vm910_vm3, %v397_v44, 0 }
 0x62f   :  { %v902_v45 = vpack.c.bf16 %v894_v41, %v894_v41  ;;  %v893_v48 = vmul.f32 %v4203_v46, %v4647_v63  ;;  %v4098_v41 = vld [vmem:[%s5264_s7 + $0x10] sm:$0xff]  }
 0x631   :  { %3872 = vmatmul.mubr.msk.bf16.vlgmr.msra.gmra.mrb[36].mxu1 %vm810_vm5, %v902_v45  ;;  %v873_v50 = vpop.xlane.xlu0 %872  ;;  %v901_v53 = vpack.c.bf16 %v893_v48, %v893_v48 }
 0x632   :  { %3882 = vmatpush3.bf16.msra.mxu1 %v1142_v47  ;;  %4204 = vrcp.f32 %v873_v50  ;;  %3883 = vmatprep.mubr.msk.bf16.mxu1 %vm4301_vm1, %v4299_v6 }
 0x633   :  { %3893 = vmatprep.subr.bf16.mxu1 %v4299_v6  ;;  %4206 = vrcp.f32 %v879_v43  ;;  %v4099_v43 = vld [vmem:[%s5264_s7 + $0x18] sm:$0xff]  }
 0x635   :  { %v391_v49 = vpop.permute.xlu0 %390 }
 0x636   :  { %v1004_v51 = vsel %vm910_vm3, %v391_v49, 0 }
 0x637   :  { %3864 = vmatpush3.bf16.msra.mxu0 %v1004_v51 }
 0x638   :  { %3875 = vmatprep.subr.bf16.mxu0 %v4299_v6 }
 0x639   :  { %v399_v58 = vpop.permute.xlu0 %398 }
 0x63a   :  { %3866 = vmatmul.mubr.msk.bf16.vlgmr.msra.gmra.mrb[12].mxu0 %vm810_vm5, %v901_v53  ;;  %v1188_v54 = vsel %vm910_vm3, %v399_v58, 0 }
 0x63b   :  { %3876 = vmatpush3.bf16.msra.mxu0 %v1096_v55  ;;  %3877 = vmatprep.mubr.msk.bf16.mxu0 %vm4301_vm1, %v4299_v6 }
 0x63c   :  { %v4205_v56 = vpop.eup %4204  ;;  %3887 = vmatprep.subr.bf16.mxu0 %v4299_v6 }
 0x63d   :  { %v895_v57 = vmul.f32 %v4205_v56, %v4656_v13  ;;  %v4207_v61 = vpop.eup %4206 }
 0x63e   :  { %v897_v62 = vmul.f32 %v4207_v61, %v4652_v11 }
 0x63f   :  { %v903_v59 = vpack.c.bf16 %v895_v57, %v895_v57 }
 0x640   :  { %v905_v63 = vpack.c.bf16 %v897_v62, %v897_v62 }
 0x642   :  { %3878 = vmatmul.mubr.msk.bf16.vlgmr.msra.gmra.mrb[16].mxu0 %vm810_vm5, %v903_v59 }
 0x643   :  { %3888 = vmatpush3.bf16.msra.mxu0 %v1188_v54  ;;  %3889 = vmatprep.mubr.msk.bf16.mxu0 %vm4301_vm1, %v4299_v6 }
 0x644   :  { %3899 = vmatprep.subr.bf16.mxu0 %v4299_v6 }
 0x64a   :  { %3890 = vmatmul.mubr.msk.bf16.vlgmr.msra.gmra.mrb[20].mxu0 %vm810_vm5, %v905_v63 }
 0x64b   :  { %3907 = vmatprep.mubr.msk.bf16.mxu0 %vm4301_vm1, %v4299_v6  ;;  %3900 = vmatpush3.bf16.msra.mxu0 %v4096_v23 }
 0x64c   :  { %3901 = vmatprep.subr.bf16.mxu0 %v4299_v6 }
 0x64f   :  { %3902 = vmatpush3.bf16.msra.mxu0 %v4097_v40 }
 0x650   :  { %3903 = vmatprep.subr.bf16.mxu0 %v4299_v6 }
 0x653   :  { %3904 = vmatpush3.bf16.msra.mxu0 %v4098_v41 }
 0x654   :  { %3905 = vmatprep.subr.bf16.mxu0 %v4299_v6 }
 0x657   :  { %3906 = vmatpush3.bf16.msra.mxu0 %v4099_v43 }
 0x65e   :  { %v876_v60 = vpop.xlane.xlu1 %875 }
 0x65f   :  { %4208 = vrcp.f32 %v876_v60 }
 0x662   :  { %v882_v0 = vpop.xlane.xlu1 %881 }
 0x663   :  { %4210 = vrcp.f32 %v882_v0 }
 0x666   :  { %v401_v7 = vpop.permute.xlu1 %400 }
 0x667   :  { %v1234_v10 = vsel %vm910_vm3, %v401_v7, 0 }
 0x669   :  { %v4209_v3 = vpop.eup %4208 }
 0x66a   :  { %v896_v5 = vmul.f32 %v4209_v3, %v4197_v31 }
 0x66c   :  { %v904_v8 = vpack.c.bf16 %v896_v5, %v896_v5 }
 0x66d   :  { %v4211_v9 = vpop.eup %4210 }
 0x66e   :  { %3884 = vmatmul.mubr.msk.bf16.vlgmr.msra.gmra.mrb[40].mxu1 %vm810_vm5, %v904_v8  ;;  %v898_v4 = vmul.f32 %v4211_v9, %v4679_v33 }
 0x66f   :  { %3894 = vmatpush3.bf16.msra.mxu1 %v1234_v10  ;;  %3895 = vmatprep.mubr.msk.bf16.mxu1 %vm4301_vm1, %v4299_v6 }
 0x670   :  { %v906_v11 = vpack.c.bf16 %v898_v4, %v898_v4  ;;  %v3495_v4 = vld [vmem:[%s5265_s8] ss:$0 sm:$0xff] }
 0x676   :  { %3896 = vmatmul.mubr.msk.bf16.vlgmr.msra.gmra.mrb[44].mxu1 %vm810_vm5, %v906_v11 }
 0x677   :  { %1534 = vmatprep.mubr.bf16.mxu1 %v4298_v1 }
 0x68f   :  { %v4717_v12 = vpop.f32.mrb[8].mxu0 }
 0x690   :  { %v3855_v13 = vpop.f32.mrb[9].mxu0 }
 0x691   :  { %v951_v14 = vpop.f32.mrb[10].mxu0 }
 0x692   :  { %v3856_v15 = vpop.f32.mrb[11].mxu0 }
 0x699   :  { %v994_v16 = vpop.f32.mrb[32].mxu1 }
 0x69a   :  { %v3861_v17 = vpop.f32.mrb[33].mxu1 }
 0x69b   :  { %v997_v18 = vpop.f32.mrb[34].mxu1 }
 0x69c   :  { %v3862_v19 = vpop.f32.mrb[35].mxu1 }
 0x704   :  { %v1086_v20 = vpop.f32.mrb[36].mxu1 }
 0x705   :  { %v3873_v22 = vpop.f32.mrb[37].mxu1 }
 0x706   :  { %v1089_v25 = vpop.f32.mrb[38].mxu1 }
 0x707   :  { %v3874_v26 = vpop.f32.mrb[39].mxu1 }
 0x70d   :  { %v1040_v27 = vpop.f32.mrb[12].mxu0 }
 0x70e   :  { %v4042_v28 = vpack.i.bf16 %v1086_v20, %v1040_v27  ;;  %v3867_v29 = vpop.f32.mrb[13].mxu0 }
 0x70f   :  { %v1043_v30 = vpop.f32.mrb[14].mxu0 }
 0x710   :  { %4043 = vrot.lane.b32.xlu0 %v4042_v28, %s5282_s25  ;;  %v3868_v31 = vpop.f32.mrb[15].mxu0 }
 0x711   :  { %v4102_v31 = vld [vmem:[%s5268_s11 + $0x4] ss:$8 sps:$4 sm:$0xff]  }
 0x712   :  { %1502 = vmatprep.subr.bf16.mxu1 %v4102_v31 }
 0x715   :  { %v1132_v32 = vpop.f32.mrb[16].mxu0 }
 0x716   :  { %v3879_v33 = vpop.f32.mrb[17].mxu0 }
 0x717   :  { %v1135_v42 = vpop.f32.mrb[18].mxu0  ;;  %v4105_v33 = vld [vmem:[%s5268_s11 + $0x14] ss:$8 sps:$4 sm:$0xff]  }
 0x718   :  { %v3880_v35 = vpop.f32.mrb[19].mxu0  ;;  %v4103_v42 = vld [vmem:[%s5268_s11 + $0x10] ss:$8 sps:$4 sm:$0xff]  }
 0x719   :  { %v4108_v35 = vld [vmem:[%s5268_s11 + $0x24] ss:$8 sps:$4 sm:$0xff]  }
 0x71d   :  { %v1224_v36 = vpop.f32.mrb[20].mxu0 }
 0x71e   :  { %v3891_v37 = vpop.f32.mrb[21].mxu0 }
 0x71f   :  { %v1227_v38 = vpop.f32.mrb[22].mxu0  ;;  %v4109_v37 = vld [vmem:[%s5268_s11 + $0x30] ss:$8 sps:$4 sm:$0xff]  }
 0x720   :  { %v3892_v39 = vpop.f32.mrb[23].mxu0  ;;  %v4111_v38 = vld [vmem:[%s5268_s11 + $0x34] ss:$8 sps:$4 sm:$0xff]  }
 0x741   :  { %v1178_v44 = vpop.f32.mrb[40].mxu1 }
 0x742   :  { %v4047_v45 = vpack.i.bf16 %v1178_v44, %v1132_v32  ;;  %v3885_v46 = vpop.f32.mrb[41].mxu1  ;;  %v4100_v32 = vld [vmem:[%s5268_s11] ss:$8 sps:$4 sm:$0xff]  }
 0x743   :  { %v1181_v47 = vpop.f32.mrb[42].mxu1  ;;  %1503 = vmatpush1.bf16.msra.mxu1 %v4100_v32 }
 0x744   :  { %v3886_v50 = vpop.f32.mrb[43].mxu1  ;;  %4048 = vrot.lane.b32.xlu1 %v4047_v45, %s5281_s30  ;;  %1504 = vmatprep.subr.bf16.mxu1 %v4105_v33 }
 0x745   :  { %v3501_v50 = vld [vmem:[%s5266_s9] ss:$0 sm:$0xff] }
 0x747   :  { %1505 = vmatpush1.bf16.msra.mxu1 %v4103_v42 }
 0x748   :  { %1506 = vmatprep.subr.bf16.mxu1 %v4108_v35 }
 0x749   :  { %v1270_v48 = vpop.f32.mrb[44].mxu1 }
 0x74a   :  { %v4052_v49 = vpack.i.bf16 %v1270_v48, %v1224_v36  ;;  %v3897_v51 = vpop.f32.mrb[45].mxu1  ;;  %v4106_v36 = vld [vmem:[%s5268_s11 + $0x20] ss:$8 sps:$4 sm:$0xff]  }
 0x74b   :  { %v1273_v53 = vpop.f32.mrb[46].mxu1  ;;  %1507 = vmatpush1.bf16.msra.mxu1 %v4106_v36 }
 0x74c   :  { %v3898_v55 = vpop.f32.mrb[47].mxu1  ;;  %4053 = vrot.lane.b32.xlu0 %v4052_v49, %s5280_s23  ;;  %1508 = vmatprep.subr.bf16.mxu1 %v4111_v38  ;;  %v3502_v53 = vld [vmem:[%s5267_s10] ss:$0 sm:$0xff] }
 0x74f   :  { %1509 = vmatpush1.bf16.msra.mxu1 %v4109_v37 }
 0x782   :  { %v4044_v56 = vpop.permute.xlu0 %4043 }
 0x783   :  { %v4046_v58 = vunpack.i.h.bf16 %v4044_v56  ;;  %v4045_v59 = vunpack.i.l.bf16 %v4044_v56 }
 0x785   :  { %v1301_v63 = vsel %vm404_vm2, %v994_v16, %v4046_v58  ;;  %v1300_v60 = vsel %vm404_vm2, %v4717_v12, %v4045_v59  ;;  %v4112_v59 = vld [vmem:[%s5270_s13 + $0x40] sm:$0xff]  }
 0x786   :  { %3717 = vmatprep.subr.bf16.mxu0 %v4112_v59 }
 0x7b6   :  { %v4049_v57 = vpop.permute.xlu1 %4048 }
 0x7b7   :  { %v4051_v61 = vunpack.i.h.bf16 %v4049_v57  ;;  %v4050_v54 = vunpack.i.l.bf16 %v4049_v57 }
 0x7b9   :  { %v1304_v5 = vsel %vm1302_vm6, %v1301_v63, %v4051_v61  ;;  %v1303_v7 = vsel %vm1302_vm6, %v1300_v60, %v4050_v54  ;;  %v4113_v61 = vld [vmem:[%s5270_s13] sm:$0xff]   ;;  %v4114_v54 = vld [vmem:[%s5270_s13 + $0x48] sm:$0xff]   ;;  %v4116_v63 = vld [vmem:[%s5270_s13 + $0x50] sm:$0xff]  }
 0x7ba   :  { %v4117_v60 = vld [vmem:[%s5270_s13 + $0x10] sm:$0xff]  }
 0x7be   :  { %v4054_v62 = vpop.permute.xlu0 %4053 }
 0x7bf   :  { %v4056_v0 = vunpack.i.h.bf16 %v4054_v62  ;;  %v4055_v3 = vunpack.i.l.bf16 %v4054_v62  ;;  %v4115_v62 = vld [vmem:[%s5270_s13 + $0x8] sm:$0xff]  }
 0x7c1   :  { %v1307_v8 = vsel %vm1305_vm7, %v1304_v5, %v4056_v0  ;;  %v1306_v9 = vsel %vm1305_vm7, %v1303_v7, %v4055_v3  ;;  %v4118_v0 = vld [vmem:[%s5270_s13 + $0x58] sm:$0xff]   ;;  %v4120_v5 = vld [vmem:[%s5270_s13 + $0x60] sm:$0xff]  }
 0x7c2   :  { %v1317_v10 = vpack.c.bf16 %v1307_v8, %v1306_v9  ;;  %v4119_v3 = vld [vmem:[%s5270_s13 + $0x18] sm:$0xff]   ;;  %v4121_v7 = vld [vmem:[%s5270_s13 + $0x20] sm:$0xff]   ;;  %v4122_v8 = vld [vmem:[%s5270_s13 + $0x68] sm:$0xff]  }
 0x7c3   :  { %v4123_v9 = vld [vmem:[%s5270_s13 + $0x28] sm:$0xff]  }
 0x7c4   :  { %3908 = vmatmul.mubr.msk.bf16.vlgmr.msra.gmra.mrb[24].mxu0 %vm166_vm0, %v1317_v10  ;;  %v4124_v10 = vld [vmem:[%s5270_s13 + $0x70] sm:$0xff]  }
 0x7c5   :  { %3718 = vmatpush3.bf16.msra.mxu0 %v4113_v61 }
 0x7c6   :  { %3719 = vmatprep.subr.bf16.mxu0 %v4114_v54 }
 0x7c9   :  { %3720 = vmatpush3.bf16.msra.mxu0 %v4115_v62 }
 0x7ca   :  { %3721 = vmatprep.subr.bf16.mxu0 %v4116_v63 }
 0x7cd   :  { %3722 = vmatpush3.bf16.msra.mxu0 %v4117_v60 }
 0x7ce   :  { %3723 = vmatprep.subr.bf16.mxu0 %v4118_v0 }
 0x7d1   :  { %3724 = vmatpush3.bf16.msra.mxu0 %v4119_v3 }
 0x7d2   :  { %3725 = vmatprep.subr.bf16.mxu0 %v4120_v5 }
 0x7d5   :  { %3726 = vmatpush3.bf16.msra.mxu0 %v4121_v7  ;;  %v3512_v7 = vld [vmem:[%s5271_s14] ss:$0 sm:$0xff] }
 0x7d6   :  { %3727 = vmatprep.subr.bf16.mxu0 %v4122_v8 }
 0x7d9   :  { %3728 = vmatpush3.bf16.msra.mxu0 %v4123_v9 }
 0x7da   :  { %3729 = vmatprep.subr.bf16.mxu0 %v4124_v10 }
 0x897   :  { %v1385_v11 = vpop.f32.mrb[24].mxu0 }
 0x898   :  { %v1386_v13 = vadd.f32 %v3495_v4, %v1385_v11  ;;  %v3909_v12 = vpop.f32.mrb[25].mxu0  ;;  %v4126_v11 = vld [vmem:[%s5270_s13 + $0x78] sm:$0xff]  }
 0x899   :  { %v1388_v14 = vpop.f32.mrb[26].mxu0  ;;  %v1446_v12 = vld [vmem:[%s5269_s12] sm:$0x3] }
 0x89a   :  { %v4749_v15 = vadd.f32 %v1386_v13, %v4474_v21  ;;  %v1389_v16 = vadd.f32 %v3495_v4, %v1388_v14  ;;  %v3910_v17 = vpop.f32.mrb[27].mxu0  ;;  %v4125_v4 = vld [vmem:[%s5270_s13 + $0x30] sm:$0xff]   ;;  %v4127_v13 = vld [vmem:[%s5270_s13 + $0x38] sm:$0xff]   ;;  %v1452_v14 = vrot.slane %v1446_v12, %v4521_v2 }
 0x89b   :  { %3730 = vmatpush3.bf16.msra.mxu0 %v4125_v4 }
 0x89c   :  { %v4752_v18 = vadd.f32 %v1389_v16, %v4476_v24  ;;  %v1396_v19 = vsel %vm166_vm0, %v4749_v15, 0.0  ;;  %3731 = vmatprep.subr.bf16.mxu0 %v4126_v11  ;;  %v1456_v16 = vrot.slane %v1446_v12, %v4566_v34 }
 0x89d   :  { %1397 = vadd.xlane.f32.xlu1 %v1396_v19 }
 0x89e   :  { %v1399_v20 = vsel %vm166_vm0, %v4752_v18, 0.0 }
 0x89f   :  { %1400 = vadd.xlane.f32.xlu0 %v1399_v20  ;;  %3732 = vmatpush3.bf16.msra.mxu0 %v4127_v13 }
 0x8a0   :  { %3923 = vmatprep.subr.bf16.mxu0 %v4299_v6 }
 0x92a   :  { %v1398_v22 = vpop.xlane.xlu1 %1397 }
 0x92b   :  { %v1402_v23 = vmul.f32 0.015625, %v1398_v22 }
 0x92c   :  { %v1401_v25 = vpop.xlane.xlu0 %1400 }
 0x92d   :  { %v1404_v26 = vsub.f32 %v4749_v15, %v1402_v23  ;;  %v1403_v21 = vmul.f32 0.015625, %v1401_v25 }
 0x92f   :  { %v1405_v27 = vsub.f32 %v4752_v18, %v1403_v21  ;;  %v1406_v28 = vmul.f32 %v1404_v26, %v1404_v26 }
 0x931   :  { %v1408_v24 = vsel %vm166_vm0, %v1406_v28, 0.0  ;;  %v1407_v29 = vmul.f32 %v1405_v27, %v1405_v27 }
 0x932   :  { %1409 = vadd.xlane.f32.xlu0 %v1408_v24 }
 0x933   :  { %v1411_v30 = vsel %vm166_vm0, %v1407_v29, 0.0 }
 0x936   :  { %1412 = vadd.xlane.f32.xlu0 %v1411_v30 }
 0x9bf   :  { %v1410_v39 = vpop.xlane.xlu0 %1409 }
 0x9c0   :  { %v1414_v40 = vmul.f32 0.015625, %v1410_v39 }
 0x9c2   :  { %v1416_v41 = vadd.f32 1e-12, %v1414_v40 }
 0x9c3   :  { %v1413_v43 = vpop.xlane.xlu0 %1412 }
 0x9c4   :  { %4212 = vrsqrt.f32 %v1416_v41  ;;  %v1415_v44 = vmul.f32 0.015625, %v1413_v43 }
 0x9c6   :  { %v1417_v45 = vadd.f32 1e-12, %v1415_v44 }
 0x9c8   :  { %4214 = vrsqrt.f32 %v1417_v45 }
 0x9ce   :  { %v4213_v46 = vpop.eup %4212 }
 0x9cf   :  { %v1420_v47 = vmul.f32 %v4213_v46, %v1404_v26 }
 0x9d1   :  { %v1428_v49 = vmul.f32 %v3501_v50, %v1420_v47 }
 0x9d2   :  { %v4215_v48 = vpop.eup %4214 }
 0x9d3   :  { %v1421_v51 = vmul.f32 %v4215_v48, %v1405_v27  ;;  %v1436_v56 = vadd.f32 %v3502_v53, %v1428_v49 }
 0x9d5   :  { %v1429_v55 = vmul.f32 %v3501_v50, %v1421_v51 }
 0x9d7   :  { %v1437_v57 = vadd.f32 %v3502_v53, %v1429_v55 }
 0x9d9   :  { %v1447_v58 = vpack.c.bf16 %v1437_v57, %v1436_v56 }
 0x9db   :  { %3511 = vmatmul.mubr.msk.bf16.vlgmr.msra.gmra.mrb[48].mxu1 %vm166_vm0, %v1447_v58 }
 0x9dc   :  { %1905 = vmatprep.mubr.bf16.mxu1 %v4298_v1 }
 0xaae   :  { %v1536_v17 = vpop.f32.mrb[48].mxu1 }
 0xaaf   :  { %v1537_v19 = vadd.f32 %v1536_v17, %v1452_v14  ;;  %v1538_v20 = vpop.f32.mrb[49].mxu1 }
 0xab0   :  { %v1539_v22 = vadd.f32 %v1538_v20, %v1456_v16  ;;  %v1540_v23 = vpop.f32.mrb[50].mxu1 }
 0xab1   :  { %v1545_v25 = vmul.f32 %v1537_v19, %v1537_v19  ;;  %v1541_v26 = vadd.f32 %v1540_v23, %v1452_v14  ;;  %v1542_v21 = vpop.f32.mrb[51].mxu1 }
 0xab2   :  { %v1546_v27 = vmul.f32 %v1539_v22, %v1539_v22  ;;  %v1543_v28 = vadd.f32 %v1542_v21, %v1456_v16 }
 0xab3   :  { %v1549_v24 = vmul.f32 %v1545_v25, %v1537_v19  ;;  %v1547_v29 = vmul.f32 %v1541_v26, %v1541_v26 }
 0xab4   :  { %v1550_v30 = vmul.f32 %v1546_v27, %v1539_v22  ;;  %v1548_v31 = vmul.f32 %v1543_v28, %v1543_v28 }
 0xab5   :  { %v1553_v32 = vmul.f32 0.044715, %v1549_v24  ;;  %v1551_v33 = vmul.f32 %v1547_v29, %v1541_v26  ;;  %v4130_v24 = vld [vmem:[%s5262_s5 + $0x44] ss:$8 sps:$4 sm:$0xff]   ;;  %v4128_v29 = vld [vmem:[%s5262_s5 + $0x40] ss:$8 sps:$4 sm:$0xff]  }
 0xab6   :  { %v1554_v42 = vmul.f32 0.044715, %v1550_v30  ;;  %v1552_v35 = vmul.f32 %v1548_v31, %v1543_v28  ;;  %1873 = vmatprep.subr.bf16.mxu1 %v4130_v24  ;;  %v4133_v30 = vld [vmem:[%s5262_s5 + $0x54] ss:$8 sps:$4 sm:$0xff]   ;;  %v4131_v31 = vld [vmem:[%s5262_s5 + $0x50] ss:$8 sps:$4 sm:$0xff]  }
 0xab7   :  { %v1557_v36 = vadd.f32 %v1553_v32, %v1537_v19  ;;  %v1555_v37 = vmul.f32 0.044715, %v1551_v33  ;;  %1874 = vmatpush1.bf16.msra.mxu1 %v4128_v29  ;;  %v4136_v32 = vld [vmem:[%s5262_s5 + $0x64] ss:$8 sps:$4 sm:$0xff]   ;;  %v4134_v33 = vld [vmem:[%s5262_s5 + $0x60] ss:$8 sps:$4 sm:$0xff]  }
 0xab8   :  { %v1558_v38 = vadd.f32 %v1554_v42, %v1539_v22  ;;  %v1556_v39 = vmul.f32 0.044715, %v1552_v35  ;;  %1875 = vmatprep.subr.bf16.mxu1 %v4133_v30  ;;  %v4137_v42 = vld [vmem:[%s5262_s5 + $0x70] ss:$8 sps:$4 sm:$0xff]   ;;  %v4139_v35 = vld [vmem:[%s5262_s5 + $0x74] ss:$8 sps:$4 sm:$0xff]  }
 0xab9   :  { %v1561_v40 = vmul.f32 0.7978846, %v1557_v36  ;;  %v1559_v41 = vadd.f32 %v1555_v37, %v1541_v26 }
 0xaba   :  { %v1562_v43 = vmul.f32 0.7978846, %v1558_v38  ;;  %v1560_v44 = vadd.f32 %v1556_v39, %v1543_v28 }
 0xabb   :  { %4216 = vtanh.f32 %v1561_v40  ;;  %v1563_v45 = vmul.f32 0.7978846, %v1559_v41  ;;  %1876 = vmatpush1.bf16.msra.mxu1 %v4131_v31 }
 0xabc   :  { %4218 = vtanh.f32 %v1562_v43  ;;  %v1564_v46 = vmul.f32 0.7978846, %v1560_v44  ;;  %1877 = vmatprep.subr.bf16.mxu1 %v4136_v32  ;;  %v3531_v44 = vld [vmem:[%s5290_s27 + $0x1] ss:$0 sm:$0xff]  ;;  %s5291_s27 = smov 16  }
 0xabd   :  { %4220 = vtanh.f32 %v1563_v45 }
 0xabe   :  { %4222 = vtanh.f32 %v1564_v46 }
 0xabf   :  { %1878 = vmatpush1.bf16.msra.mxu1 %v4134_v33 }
 0xac0   :  { %1879 = vmatprep.subr.bf16.mxu1 %v4139_v35 }
 0xac3   :  { %1880 = vmatpush1.bf16.msra.mxu1 %v4137_v42 }
 0xac4   :  { %3911 = vmatprep.subr.bf16.mxu1 %v4299_v6 }
 0xac5   :  { %v4217_v47 = vpop.eup %4216 }
 0xac6   :  { %v4219_v50 = vpop.eup %4218  ;;  %v1569_v48 = vadd.f32 1.0, %v4217_v47 }
 0xac7   :  { %v4221_v49 = vpop.eup %4220  ;;  %v1570_v51 = vadd.f32 1.0, %v4219_v50 }
 0xac8   :  { %v4223_v53 = vpop.eup %4222  ;;  %v1573_v55 = vmul.f32 0.5, %v1569_v48  ;;  %v1571_v56 = vadd.f32 1.0, %v4221_v49  ;;  %v3532_v48 = vld [vmem:[%s5261_s4 + $0x1] ss:$0 sm:$0xff] }
 0xac9   :  { %v1572_v57 = vadd.f32 1.0, %v4223_v53  ;;  %v1574_v58 = vmul.f32 0.5, %v1570_v51 }
 0xaca   :  { %v1575_v59 = vmul.f32 0.5, %v1571_v56  ;;  %v1577_v54 = vmul.f32 %v1573_v55, %v1537_v19  ;;  %v4904_v56 = vld [vmem:[%s5263_s6 + $0x2] sm:$0x3] }
 0xacb   :  { %v1576_v61 = vmul.f32 0.5, %v1572_v57  ;;  %v1578_v63 = vmul.f32 %v1574_v58, %v1539_v22  ;;  %v1823_v57 = vrot.slane %v4904_v56, %v4521_v2  ;;  %v1827_v30 = vrot.slane %v4904_v56, %v4566_v34 }
 0xacc   :  { %v1579_v62 = vmul.f32 %v1575_v59, %v1541_v26 }
 0xacd   :  { %v1580_v60 = vmul.f32 %v1576_v61, %v1543_v28 }
 0xace   :  { %v1614_v0 = vpack.c.bf16 %v1579_v62, %v1577_v54 }
 0xacf   :  { %v1615_v3 = vpack.c.bf16 %v1580_v60, %v1578_v63 }
 0xad1   :  { %1750 = vmatprep.mubr.bf16.mxu0 %v1615_v3 }
 0xad2   :  { %1751 = vmatmul.mubr.bf16.vlgmr.msra.gmra.mrb[28].mxu0 %v1614_v0 }
 0xad3   :  { %3925 = vmatprep.mubr.msk.bf16.mxu0 %vm4301_vm1, %v4299_v6 }
 0xba5   :  { %v3733_v5 = vpop.f32.mrb[28].mxu0 }
 0xba6   :  { %v3734_v8 = vpop.f32.mrb[29].mxu0 }
 0xba7   :  { %v3735_v9 = vadd.f32 %v3734_v8, %v3733_v5  ;;  %v3736_v10 = vpop.f32.mrb[30].mxu0 }
 0xba8   :  { %v3737_v4 = vpop.f32.mrb[31].mxu0 }
 0xba9   :  { %v1753_v11 = vadd.f32 %v3735_v9, %v3512_v7  ;;  %v3738_v13 = vadd.f32 %v3737_v4, %v3736_v10 }
 0xbab   :  { %v4854_v12 = vadd.f32 %v1753_v11, %v4749_v15  ;;  %v1756_v14 = vadd.f32 %v3738_v13, %v3512_v7 }
 0xbad   :  { %v4857_v16 = vadd.f32 %v1756_v14, %v4752_v18  ;;  %v1765_v17 = vsel %vm166_vm0, %v4854_v12, 0.0 }
 0xbae   :  { %1766 = vadd.xlane.f32.xlu1 %v1765_v17 }
 0xbaf   :  { %v1768_v19 = vsel %vm166_vm0, %v4857_v16, 0.0 }
 0xbb0   :  { %1769 = vadd.xlane.f32.xlu0 %v1768_v19 }
 0xc3b   :  { %v1767_v20 = vpop.xlane.xlu1 %1766 }
 0xc3c   :  { %v1771_v22 = vmul.f32 0.015625, %v1767_v20 }
 0xc3d   :  { %v1770_v23 = vpop.xlane.xlu0 %1769 }
 0xc3e   :  { %v1773_v25 = vsub.f32 %v4854_v12, %v1771_v22  ;;  %v1772_v26 = vmul.f32 0.015625, %v1770_v23 }
 0xc40   :  { %v1774_v15 = vsub.f32 %v4857_v16, %v1772_v26  ;;  %v1775_v21 = vmul.f32 %v1773_v25, %v1773_v25 }
 0xc42   :  { %v1777_v18 = vsel %vm166_vm0, %v1775_v21, 0.0  ;;  %v1776_v27 = vmul.f32 %v1774_v15, %v1774_v15 }
 0xc43   :  { %1778 = vadd.xlane.f32.xlu1 %v1777_v18 }
 0xc44   :  { %v1780_v28 = vsel %vm166_vm0, %v1776_v27, 0.0 }
 0xc45   :  { %1781 = vadd.xlane.f32.xlu0 %v1780_v28 }
 0xcd0   :  { %v1779_v36 = vpop.xlane.xlu1 %1778 }
 0xcd1   :  { %v1783_v37 = vmul.f32 0.015625, %v1779_v36 }
 0xcd2   :  { %v1782_v38 = vpop.xlane.xlu0 %1781 }
 0xcd3   :  { %v1785_v39 = vadd.f32 1e-12, %v1783_v37  ;;  %v1784_v40 = vmul.f32 0.015625, %v1782_v38 }
 0xcd5   :  { %4224 = vrsqrt.f32 %v1785_v39  ;;  %v1786_v41 = vadd.f32 1e-12, %v1784_v40 }
 0xcd7   :  { %4226 = vrsqrt.f32 %v1786_v41 }
 0xcdf   :  { %v4225_v43 = vpop.eup %4224 }
 0xce0   :  { %v1789_v45 = vmul.f32 %v4225_v43, %v1773_v25 }
 0xce1   :  { %v4227_v46 = vpop.eup %4226 }
 0xce2   :  { %v1797_v47 = vmul.f32 %v3531_v44, %v1789_v45  ;;  %v1790_v50 = vmul.f32 %v4227_v46, %v1774_v15 }
 0xce4   :  { %v1798_v49 = vmul.f32 %v3531_v44, %v1790_v50  ;;  %v1805_v51 = vadd.f32 %v3532_v48, %v1797_v47 }
 0xce6   :  { %v1806_v53 = vadd.f32 %v3532_v48, %v1798_v49 }
 0xce8   :  { %v1818_v55 = vpack.c.bf16 %v1806_v53, %v1805_v51 }
 0xcea   :  { %3550 = vmatmul.mubr.msk.bf16.vlgmr.msra.gmra.mrb[52].mxu1 %vm166_vm0, %v1818_v55 }
 0xceb   :  { %3913 = vmatprep.mubr.msk.bf16.mxu1 %vm4301_vm1, %v4299_v6 }
 0xdbd   :  { %v1907_v58 = vpop.f32.mrb[52].mxu1 }
 0xdbe   :  { %v1908_v59 = vadd.f32 %v1907_v58, %v1823_v57  ;;  %v4908_v61 = vpop.f32.mrb[53].mxu1 }
 0xdbf   :  { %v1911_v54 = vpop.f32.mrb[54].mxu1  ;;  %v1910_v33 = vadd.f32 %v4908_v61, %v1827_v30 }
 0xdc0   :  { %v3676_v62 = vpack.c.bf16 %v1908_v59, %v1908_v59  ;;  %v1912_v63 = vadd.f32 %v1911_v54, %v1823_v57  ;;  %v4910_v60 = vpop.f32.mrb[55].mxu1 }
 0xdc1   :  { %v1914_v35 = vadd.f32 %v4910_v60, %v1827_v30  ;;  %v4963_v37 = vpack.c.bf16 %v1910_v33, %v1910_v33 }
 0xdc2   :  { %v3677_v0 = vpack.c.bf16 %v1912_v63, %v1912_v63  ;;  %1923 = vrot.lane.b32.xlu1 %v3676_v62, %s4300_s21 }
 0xdc3   :  { %v4966_v38 = vpack.c.bf16 %v1914_v35, %v1914_v35  ;;  %v2456_v39 = vsel %vm910_vm3, %v4963_v37, 0 }
 0xdc4   :  { %1925 = vrot.lane.b32.xlu0 %v3677_v0, %s4300_s21 }
 0xdc5   :  { %v2502_v40 = vsel %vm910_vm3, %v4966_v38, 0 }
 0xdc6   :  { %1927 = vrot.lane.b32.xlu1 %v3676_v62, %s4303_s22 }
 0xdc8   :  { %1933 = vrot.lane.b32.xlu0 %v3677_v0, %s4302_s1 }
 0xdca   :  { %1929 = vrot.lane.b32.xlu1 %v3677_v0, %s4303_s22 }
 0xdcc   :  { %2000 = vrot.lane.b32.xlu0 %v3677_v0, %s4304_s2 }
 0xdce   :  { %1931 = vrot.lane.b32.xlu1 %v3676_v62, %s4302_s1 }
 0xdd2   :  { %1952 = vrot.lane.b32.xlu1 %v3676_v62, %s4304_s2 }
 0xe34   :  { %v1924_v3 = vpop.permute.xlu1 %1923 }
 0xe35   :  { %v3557_v5 = vcombine.low %v1924_v3, %v1924_v3 }
 0xe36   :  { %v1926_v7 = vpop.permute.xlu0 %1925 }
 0xe37   :  { %v3559_v8 = vcombine.low %v1926_v7, %v1926_v7  ;;  %2050 = vrot.lane.b32.xlu1 %v3557_v5, %s4304_s2 }
 0xe38   :  { %v1928_v9 = vpop.permute.xlu1 %1927 }
 0xe39   :  { %v3561_v10 = vcombine.low %v1928_v9, %v1928_v9  ;;  %2100 = vrot.lane.b32.xlu0 %v3559_v8, %s4304_s2 }
 0xe3a   :  { %v1934_v13 = vpop.permute.xlu0 %1933 }
 0xe3b   :  { %2150 = vrot.lane.b32.xlu1 %v3561_v10, %s4304_s2  ;;  %v3567_v17 = vcombine.low %v1934_v13, %v1934_v13 }
 0xe3c   :  { %v1930_v4 = vpop.permute.xlu1 %1929 }
 0xe3d   :  { %v3563_v11 = vcombine.low %v1930_v4, %v1930_v4 }
 0xe3e   :  { %v2001_v23 = vpop.permute.xlu0 %2000 }
 0xe3f   :  { %2200 = vrot.lane.b32.xlu0 %v3563_v11, %s4304_s2  ;;  %v2006_v25 = vsel %vm404_vm2, %v2001_v23, 0 }
 0xe40   :  { %v1932_v14 = vpop.permute.xlu1 %1931 }
 0xe41   :  { %v3565_v19 = vcombine.low %v1932_v14, %v1932_v14 }
 0xe43   :  { %2300 = vrot.lane.b32.xlu0 %v3567_v17, %s4304_s2  ;;  %2250 = vrot.lane.b32.xlu1 %v3565_v19, %s4304_s2 }
 0xe44   :  { %v1953_v20 = vpop.permute.xlu1 %1952 }
 0xe45   :  { %v1958_v22 = vsel %vm404_vm2, %v1953_v20, 0 }
 0xe46   :  { %3912 = vmatpush3.bf16.xpose.msra.mxu1 %v1958_v22 }
 0xe47   :  { %3917 = vmatprep.subr.bf16.mxu1 %v4299_v6 }
 0xe4d   :  { %3914 = vmatmul.mubr.msk.bf16.vlgmr.msra.gmra.mrb[56].mxu1 %vm404_vm2, %v3676_v62 }
 0xe4e   :  { %3918 = vmatpush3.bf16.xpose.msra.mxu1 %v2006_v25  ;;  %3919 = vmatprep.mubr.msk.bf16.mxu1 %vm4301_vm1, %v4299_v6 }
 0xe4f   :  { %3929 = vmatprep.subr.bf16.mxu1 %v4299_v6 }
 0xe55   :  { %3920 = vmatmul.mubr.msk.bf16.vlgmr.msra.gmra.mrb[60].mxu1 %vm404_vm2, %v3677_v0 }
 0xe56   :  { %3931 = vmatprep.mubr.msk.bf16.mxu1 %vm4301_vm1, %v4299_v6 }
 0xea9   :  { %v2051_v26 = vpop.permute.xlu1 %2050 }
 0xeaa   :  { %v2056_v15 = vsel %vm404_vm2, %v2051_v26, 0 }
 0xeab   :  { %v2101_v21 = vpop.permute.xlu0 %2100  ;;  %3924 = vmatpush3.bf16.xpose.msra.mxu0 %v2056_v15 }
 0xeac   :  { %v2106_v18 = vsel %vm404_vm2, %v2101_v21, 0  ;;  %3935 = vmatprep.subr.bf16.mxu0 %v4299_v6 }
 0xead   :  { %3930 = vmatpush3.bf16.xpose.msra.mxu1 %v2106_v18  ;;  %v2151_v27 = vpop.permute.xlu1 %2150 }
 0xeae   :  { %3941 = vmatprep.subr.bf16.mxu1 %v4299_v6  ;;  %v2156_v24 = vsel %vm404_vm2, %v2151_v27, 0 }
 0xeb1   :  { %v2201_v28 = vpop.permute.xlu0 %2200 }
 0xeb2   :  { %3926 = vmatmul.mubr.msk.bf16.vlgmr.msra.gmra.mrb[32].mxu0 %vm404_vm2, %v1924_v3  ;;  %v2206_v29 = vsel %vm404_vm2, %v2201_v28, 0 }
 0xeb3   :  { %3936 = vmatpush3.bf16.xpose.msra.mxu0 %v2156_v24  ;;  %3937 = vmatprep.mubr.msk.bf16.mxu0 %vm4301_vm1, %v4299_v6 }
 0xeb4   :  { %3932 = vmatmul.mubr.msk.bf16.vlgmr.msra.gmra.mrb[64].mxu1 %vm404_vm2, %v1926_v7  ;;  %3947 = vmatprep.subr.bf16.mxu0 %v4299_v6 }
 0xeb5   :  { %3942 = vmatpush3.bf16.xpose.msra.mxu1 %v2206_v29  ;;  %3943 = vmatprep.mubr.msk.bf16.mxu1 %vm4301_vm1, %v4299_v6  ;;  %v2251_v31 = vpop.permute.xlu1 %2250  ;;  %v2301_v32 = vpop.permute.xlu0 %2300 }
 0xeb6   :  { %3953 = vmatprep.subr.bf16.mxu1 %v4299_v6  ;;  %v2256_v42 = vsel %vm404_vm2, %v2251_v31, 0  ;;  %v2306_v36 = vsel %vm404_vm2, %v2301_v32, 0 }
 0xeba   :  { %3938 = vmatmul.mubr.msk.bf16.vlgmr.msra.gmra.mrb[36].mxu0 %vm404_vm2, %v1928_v9 }
 0xebb   :  { %3948 = vmatpush3.bf16.xpose.msra.mxu0 %v2256_v42  ;;  %3949 = vmatprep.mubr.msk.bf16.mxu0 %vm4301_vm1, %v4299_v6 }
 0xebc   :  { %3944 = vmatmul.mubr.msk.bf16.vlgmr.msra.gmra.mrb[68].mxu1 %vm404_vm2, %v1930_v4  ;;  %3959 = vmatprep.subr.bf16.mxu0 %v4299_v6 }
 0xebd   :  { %3954 = vmatpush3.bf16.xpose.msra.mxu1 %v2306_v36  ;;  %3955 = vmatprep.mubr.msk.bf16.mxu1 %vm4301_vm1, %v4299_v6 }
 0xebe   :  { %3965 = vmatprep.subr.bf16.mxu1 %v4299_v6 }
 0xec2   :  { %3950 = vmatmul.mubr.msk.bf16.vlgmr.msra.gmra.mrb[40].mxu0 %vm404_vm2, %v1932_v14 }
 0xec3   :  { %3960 = vmatpush3.bf16.msra.mxu0 %v2456_v39  ;;  %3961 = vmatprep.mubr.msk.bf16.mxu0 %vm4301_vm1, %v4299_v6 }
 0xec4   :  { %3956 = vmatmul.mubr.msk.bf16.vlgmr.msra.gmra.mrb[72].mxu1 %vm404_vm2, %v1934_v13  ;;  %3971 = vmatprep.subr.bf16.mxu0 %v4299_v6 }
 0xec5   :  { %3966 = vmatpush3.bf16.msra.mxu1 %v2502_v40  ;;  %3967 = vmatprep.mubr.msk.bf16.mxu1 %vm4301_vm1, %v4299_v6 }
 0xec6   :  { %3977 = vmatprep.subr.bf16.mxu1 %v4299_v6 }
 0xf20   :  { %v1994_v41 = vpop.f32.mrb[56].mxu1 }
 0xf21   :  { %v2348_v43 = vsel %vm801_vm4, %v1994_v41, -1e+30  ;;  %v3915_v44 = vpop.f32.mrb[57].mxu1 }
 0xf22   :  { %v1997_v45 = vpop.f32.mrb[58].mxu1  ;;  %v2356_v46 = vsel %vm810_vm5, %v2348_v43, -inf }
 0xf23   :  { %2357 = vmax.xlane.f32.xlu1 %v2356_v46  ;;  %v3916_v47 = vpop.f32.mrb[59].mxu1 }
 0xf28   :  { %v2042_v50 = vpop.f32.mrb[60].mxu1 }
 0xf29   :  { %v2349_v48 = vsel %vm801_vm4, %v2042_v50, -1e+30  ;;  %v3921_v49 = vpop.f32.mrb[61].mxu1 }
 0xf2a   :  { %v2045_v51 = vpop.f32.mrb[62].mxu1  ;;  %v2359_v53 = vsel %vm810_vm5, %v2349_v48, -inf }
 0xf2b   :  { %2360 = vmax.xlane.f32.xlu0 %v2359_v53  ;;  %v3922_v55 = vpop.f32.mrb[63].mxu1 }
 0xf85   :  { %v2092_v56 = vpop.f32.mrb[32].mxu0 }
 0xf86   :  { %v2350_v57 = vsel %vm801_vm4, %v2092_v56, -1e+30  ;;  %v3927_v58 = vpop.f32.mrb[33].mxu0 }
 0xf87   :  { %v2095_v59 = vpop.f32.mrb[34].mxu0  ;;  %v2142_v61 = vpop.f32.mrb[64].mxu1  ;;  %v2362_v54 = vsel %vm810_vm5, %v2350_v57, -inf }
 0xf88   :  { %v2351_v62 = vsel %vm801_vm4, %v2142_v61, -1e+30  ;;  %v3933_v63 = vpop.f32.mrb[65].mxu1  ;;  %2363 = vmax.xlane.f32.xlu0 %v2362_v54  ;;  %v3928_v60 = vpop.f32.mrb[35].mxu0 }
 0xf89   :  { %v2145_v0 = vpop.f32.mrb[66].mxu1  ;;  %v2365_v5 = vsel %vm810_vm5, %v2351_v62, -inf }
 0xf8a   :  { %v3934_v3 = vpop.f32.mrb[67].mxu1 }
 0xf8c   :  { %2366 = vmax.xlane.f32.xlu0 %v2365_v5 }
 0xf8d   :  { %v2192_v7 = vpop.f32.mrb[36].mxu0 }
 0xf8e   :  { %v4994_v8 = vsel %vm801_vm4, %v2192_v7, -1e+30  ;;  %v3939_v9 = vpop.f32.mrb[37].mxu0 }
 0xf8f   :  { %v2195_v10 = vpop.f32.mrb[38].mxu0  ;;  %v2242_v4 = vpop.f32.mrb[68].mxu1  ;;  %v2368_v11 = vsel %vm810_vm5, %v4994_v8, -inf }
 0xf90   :  { %v2353_v13 = vsel %vm801_vm4, %v2242_v4, -1e+30  ;;  %v3945_v14 = vpop.f32.mrb[69].mxu1  ;;  %2369 = vmax.xlane.f32.xlu1 %v2368_v11  ;;  %v3940_v17 = vpop.f32.mrb[39].mxu0 }
 0xf91   :  { %v2245_v19 = vpop.f32.mrb[70].mxu1  ;;  %v2371_v20 = vsel %vm810_vm5, %v2353_v13, -inf }
 0xf92   :  { %v3946_v22 = vpop.f32.mrb[71].mxu1  ;;  %2372 = vmax.xlane.f32.xlu0 %v2371_v20 }
 0xf95   :  { %v2292_v23 = vpop.f32.mrb[40].mxu0 }
 0xf96   :  { %v2354_v25 = vsel %vm801_vm4, %v2292_v23, -1e+30  ;;  %v3951_v26 = vpop.f32.mrb[41].mxu0 }
 0xf97   :  { %v2295_v15 = vpop.f32.mrb[42].mxu0  ;;  %v2342_v21 = vpop.f32.mrb[72].mxu1  ;;  %v2374_v18 = vsel %vm810_vm5, %v2354_v25, -inf }
 0xf98   :  { %v2355_v27 = vsel %vm801_vm4, %v2342_v21, -1e+30  ;;  %v3957_v28 = vpop.f32.mrb[73].mxu1  ;;  %2375 = vmax.xlane.f32.xlu1 %v2374_v18  ;;  %v3952_v24 = vpop.f32.mrb[43].mxu0 }
 0xf99   :  { %v2345_v29 = vpop.f32.mrb[74].mxu1  ;;  %v2377_v30 = vsel %vm810_vm5, %v2355_v27, -inf }
 0xf9a   :  { %v3958_v31 = vpop.f32.mrb[75].mxu1  ;;  %2378 = vmax.xlane.f32.xlu0 %v2377_v30 }
 0xfa9   :  { %1940 = vrot.lane.b32.xlu1 %v4963_v37, %s4300_s21 }
 0xfb0   :  { %v2358_v32 = vpop.xlane.xlu1 %2357 }
 0xfb1   :  { %v2380_v33 = vsub.f32 %v2348_v43, %v2358_v32 }
 0xfb3   :  { %v2388_v36 = vmul.f32 1.442695, %v2380_v33 }
 0xfb8   :  { %v2361_v42 = vpop.xlane.xlu0 %2360 }
 0xfb9   :  { %v2381_v35 = vsub.f32 %v2349_v48, %v2361_v42 }
 0xfbb   :  { %v2390_v39 = vmul.f32 1.442695, %v2381_v35 }
 0xfbd   :  { %4228 = vpow2.f32 %v2390_v39 }
 0xfbe   :  { %4230 = vpow2.f32 %v2388_v36 }
 0xfc7   :  { %v4229_v52 = vpop.eup %4228 }
 0xfc8   :  { %v2407_v40 = vsel %vm810_vm5, %v4229_v52, 0.0  ;;  %v4231_v41 = vpop.eup %4230 }
 0xfc9   :  { %2408 = vadd.xlane.f32.xlu0 %v2407_v40  ;;  %v2404_v44 = vsel %vm810_vm5, %v4231_v41, 0.0 }
 0xfcd   :  { %2405 = vadd.xlane.f32.xlu1 %v2404_v44 }
0x1015   :  { %v2364_v45 = vpop.xlane.xlu0 %2363 }
0x1016   :  { %v2382_v46 = vsub.f32 %v2350_v57, %v2364_v45 }
0x1018   :  { %v2392_v47 = vmul.f32 1.442695, %v2382_v46 }
0x1019   :  { %v2367_v50 = vpop.xlane.xlu0 %2366 }
0x101a   :  { %4232 = vpow2.f32 %v2392_v47  ;;  %v2383_v43 = vsub.f32 %v2351_v62, %v2367_v50 }
0x101c   :  { %v2394_v49 = vmul.f32 1.442695, %v2383_v43 }
0x101d   :  { %v2370_v56 = vpop.xlane.xlu1 %2369 }
0x101e   :  { %4234 = vpow2.f32 %v2394_v49  ;;  %v2384_v58 = vsub.f32 %v4994_v8, %v2370_v56 }
0x101f   :  { %v2373_v57 = vpop.xlane.xlu0 %2372 }
0x1020   :  { %v2385_v59 = vsub.f32 %v2353_v13, %v2373_v57  ;;  %v2396_v62 = vmul.f32 1.442695, %v2384_v58 }
0x1022   :  { %v2398_v60 = vmul.f32 1.442695, %v2385_v59  ;;  %4236 = vpow2.f32 %v2396_v62 }
0x1024   :  { %v5011_v48 = vpop.eup %4232  ;;  %4238 = vpow2.f32 %v2398_v60 }
0x1025   :  { %v2410_v51 = vsel %vm810_vm5, %v5011_v48, 0.0  ;;  %v2376_v61 = vpop.xlane.xlu1 %2375 }
0x1026   :  { %2411 = vadd.xlane.f32.xlu1 %v2410_v51  ;;  %v2386_v63 = vsub.f32 %v2354_v25, %v2376_v61 }
0x1027   :  { %v2379_v54 = vpop.xlane.xlu0 %2378 }
0x1028   :  { %v5015_v53 = vpop.eup %4234  ;;  %v2387_v0 = vsub.f32 %v2355_v27, %v2379_v54  ;;  %v2400_v3 = vmul.f32 1.442695, %v2386_v63 }
0x1029   :  { %v2413_v55 = vsel %vm810_vm5, %v5015_v53, 0.0  ;;  %v1941_v7 = vpop.permute.xlu1 %1940 }
0x102a   :  { %2414 = vadd.xlane.f32.xlu0 %v2413_v55  ;;  %v2402_v5 = vmul.f32 1.442695, %v2387_v0  ;;  %4240 = vpow2.f32 %v2400_v3  ;;  %v2548_v18 = vsel %vm910_vm3, %v1941_v7, 0 }
0x102c   :  { %4242 = vpow2.f32 %v2402_v5  ;;  %v5026_v10 = vpop.eup %4236 }
0x102d   :  { %v2416_v14 = vsel %vm810_vm5, %v5026_v10, 0.0 }
0x102e   :  { %v5028_v8 = vpop.eup %4238 }
0x102f   :  { %v2419_v13 = vsel %vm810_vm5, %v5028_v8, 0.0 }
0x1034   :  { %v5030_v11 = vpop.eup %4240 }
0x1035   :  { %v2422_v23 = vsel %vm810_vm5, %v5030_v11, 0.0 }
0x1036   :  { %v5036_v17 = vpop.eup %4242 }
0x1037   :  { %1944 = vrot.lane.b32.xlu1 %v4963_v37, %s4303_s22  ;;  %v2425_v22 = vsel %vm810_vm5, %v5036_v17, 0.0 }
0x103b   :  { %1946 = vrot.lane.b32.xlu1 %v4966_v38, %s4303_s22 }
0x1040   :  { %1942 = vrot.lane.b32.xlu0 %v4966_v38, %s4300_s21 }
0x1056   :  { %v2409_v9 = vpop.xlane.xlu0 %2408 }
0x1057   :  { %4244 = vrcp.f32 %v2409_v9 }
0x105a   :  { %v2406_v4 = vpop.xlane.xlu1 %2405 }
0x105b   :  { %4246 = vrcp.f32 %v2406_v4 }
0x105f   :  { %2420 = vadd.xlane.f32.xlu0 %v2419_v13  ;;  %2417 = vadd.xlane.f32.xlu1 %v2416_v14 }
0x1061   :  { %v4245_v19 = vpop.eup %4244 }
0x1062   :  { %v2437_v20 = vmul.f32 %v4245_v19, %v4229_v52 }
0x1063   :  { %2426 = vadd.xlane.f32.xlu0 %v2425_v22  ;;  %2423 = vadd.xlane.f32.xlu1 %v2422_v23  ;;  %v4141_v22 = vld [vmem:[%s5264_s7 + $0x28] sm:$0xff]   ;;  %v4142_v23 = vld [vmem:[%s5264_s7 + $0x30] sm:$0xff]  }
0x1064   :  { %v2445_v25 = vpack.c.bf16 %v2437_v20, %v2437_v20 }
0x1065   :  { %v4247_v26 = vpop.eup %4246 }
0x1066   :  { %v2436_v15 = vmul.f32 %v4247_v26, %v4231_v41  ;;  %3968 = vmatmul.mubr.msk.bf16.vlgmr.msra.gmra.mrb[76].mxu1 %vm810_vm5, %v2445_v25  ;;  %v4143_v26 = vld [vmem:[%s5264_s7 + $0x38] sm:$0xff]  }
0x1067   :  { %3979 = vmatprep.mubr.msk.bf16.mxu1 %vm4301_vm1, %v4299_v6 }
0x1068   :  { %v2444_v21 = vpack.c.bf16 %v2436_v15, %v2436_v15 }
0x106a   :  { %3962 = vmatmul.mubr.msk.bf16.vlgmr.msra.gmra.mrb[44].mxu0 %vm810_vm5, %v2444_v21 }
0x106b   :  { %3972 = vmatpush3.bf16.msra.mxu0 %v2548_v18  ;;  %3973 = vmatprep.mubr.msk.bf16.mxu0 %vm4301_vm1, %v4299_v6 }
0x106c   :  { %3983 = vmatprep.subr.bf16.mxu0 %v4299_v6 }
0x1074   :  { %1948 = vrot.lane.b32.xlu1 %v4963_v37, %s4302_s1 }
0x1079   :  { %1950 = vrot.lane.b32.xlu0 %v4966_v38, %s4302_s1 }
0x10b3   :  { %v2412_v27 = vpop.xlane.xlu1 %2411 }
0x10b4   :  { %4248 = vrcp.f32 %v2412_v27 }
0x10b7   :  { %v2415_v28 = vpop.xlane.xlu0 %2414  ;;  %v1945_v31 = vpop.permute.xlu1 %1944 }
0x10b8   :  { %4250 = vrcp.f32 %v2415_v28  ;;  %v2640_v38 = vsel %vm910_vm3, %v1945_v31, 0 }
0x10bb   :  { %v1943_v24 = vpop.permute.xlu0 %1942  ;;  %v1947_v35 = vpop.permute.xlu1 %1946 }
0x10bc   :  { %v2594_v29 = vsel %vm910_vm3, %v1943_v24, 0  ;;  %v2686_v39 = vsel %vm910_vm3, %v1947_v35, 0 }
0x10bd   :  { %3978 = vmatpush3.bf16.msra.mxu1 %v2594_v29 }
0x10be   :  { %v4249_v30 = vpop.eup %4248  ;;  %3989 = vmatprep.subr.bf16.mxu1 %v4299_v6 }
0x10bf   :  { %v2438_v32 = vmul.f32 %v4249_v30, %v5011_v48 }
0x10c1   :  { %v2446_v33 = vpack.c.bf16 %v2438_v32, %v2438_v32 }
0x10c2   :  { %v4251_v42 = vpop.eup %4250 }
0x10c3   :  { %v2439_v37 = vmul.f32 %v4251_v42, %v5015_v53  ;;  %3974 = vmatmul.mubr.msk.bf16.vlgmr.msra.gmra.mrb[48].mxu0 %vm810_vm5, %v2446_v33 }
0x10c4   :  { %3984 = vmatpush3.bf16.msra.mxu0 %v2640_v38  ;;  %3985 = vmatprep.mubr.msk.bf16.mxu0 %vm4301_vm1, %v4299_v6 }
0x10c5   :  { %v2447_v36 = vpack.c.bf16 %v2439_v37, %v2439_v37  ;;  %3995 = vmatprep.subr.bf16.mxu0 %v4299_v6 }
0x10c7   :  { %3980 = vmatmul.mubr.msk.bf16.vlgmr.msra.gmra.mrb[80].mxu1 %vm810_vm5, %v2447_v36 }
0x10c8   :  { %3990 = vmatpush3.bf16.msra.mxu1 %v2686_v39  ;;  %3991 = vmatprep.mubr.msk.bf16.mxu1 %vm4301_vm1, %v4299_v6 }
0x10c9   :  { %4001 = vmatprep.subr.bf16.mxu1 %v4299_v6 }
0x10ec   :  { %v2421_v52 = vpop.xlane.xlu0 %2420  ;;  %v2418_v40 = vpop.xlane.xlu1 %2417 }
0x10ed   :  { %4252 = vrcp.f32 %v2421_v52 }
0x10ee   :  { %4254 = vrcp.f32 %v2418_v40 }
0x10f0   :  { %v2427_v41 = vpop.xlane.xlu0 %2426  ;;  %v2424_v44 = vpop.xlane.xlu1 %2423 }
0x10f1   :  { %4256 = vrcp.f32 %v2427_v41 }
0x10f2   :  { %4258 = vrcp.f32 %v2424_v44 }
0x10f4   :  { %v1951_v43 = vpop.permute.xlu0 %1950  ;;  %v1949_v49 = vpop.permute.xlu1 %1948 }
0x10f5   :  { %v2778_v56 = vsel %vm910_vm3, %v1951_v43, 0  ;;  %v2732_v57 = vsel %vm910_vm3, %v1949_v49, 0 }
0x10f7   :  { %v4253_v45 = vpop.eup %4252 }
0x10f8   :  { %v4255_v46 = vpop.eup %4254  ;;  %v2441_v47 = vmul.f32 %v4253_v45, %v5028_v8 }
0x10f9   :  { %v2440_v50 = vmul.f32 %v4255_v46, %v5026_v10  ;;  %v4140_v10 = vld [vmem:[%s5264_s7 + $0x20] sm:$0xff]   ;;  %s5293_s7 = smov 48  }
0x10fa   :  { %v2449_v48 = vpack.c.bf16 %v2441_v47, %v2441_v47 }
0x10fb   :  { %v4257_v51 = vpop.eup %4256  ;;  %v2448_v53 = vpack.c.bf16 %v2440_v50, %v2440_v50 }
0x10fc   :  { %v4259_v55 = vpop.eup %4258  ;;  %3992 = vmatmul.mubr.msk.bf16.vlgmr.msra.gmra.mrb[84].mxu1 %vm810_vm5, %v2449_v48  ;;  %v2443_v58 = vmul.f32 %v4257_v51, %v5036_v17 }
0x10fd   :  { %3986 = vmatmul.mubr.msk.bf16.vlgmr.msra.gmra.mrb[52].mxu0 %vm810_vm5, %v2448_v53  ;;  %4002 = vmatpush3.bf16.msra.mxu1 %v2778_v56  ;;  %v2442_v59 = vmul.f32 %v4259_v55, %v5030_v11 }
0x10fe   :  { %3996 = vmatpush3.bf16.msra.mxu0 %v2732_v57  ;;  %3997 = vmatprep.mubr.msk.bf16.mxu0 %vm4301_vm1, %v4299_v6  ;;  %v2451_v61 = vpack.c.bf16 %v2443_v58, %v2443_v58  ;;  %v3586_v58 = vld [vmem:[%s5265_s8 + $0x1] ss:$0 sm:$0xff]  ;;  %s3437_s8 = sshll.u32 %s4308_s3, 4  ;;  %s3438_s8 = int_to_ptr.vmem [resolvable:$true] %s3437_s8 }
0x10ff   :  { %4003 = vmatprep.mubr.msk.bf16.mxu1 %vm4301_vm1, %v4299_v6  ;;  %4007 = vmatprep.subr.bf16.mxu0 %v4299_v6  ;;  %v2450_v54 = vpack.c.bf16 %v2442_v59, %v2442_v59  ;;  %p4279_p1 = scmp.lt.s32.totalorder %s3438_s8, %s3438_s8 }
0x1104   :  { %4004 = vmatmul.mubr.msk.bf16.vlgmr.msra.gmra.mrb[88].mxu1 %vm810_vm5, %v2451_v61 }
0x1105   :  { %3998 = vmatmul.mubr.msk.bf16.vlgmr.msra.gmra.mrb[56].mxu0 %vm810_vm5, %v2450_v54  ;;  %3082 = vmatprep.mubr.bf16.mxu1 %v4298_v1 }
0x1106   :  { %4015 = vmatprep.mubr.msk.bf16.mxu0 %vm4301_vm1, %v4299_v6  ;;  %4008 = vmatpush3.bf16.msra.mxu0 %v4140_v10 }
0x1107   :  { %4009 = vmatprep.subr.bf16.mxu0 %v4299_v6 }
0x110a   :  { %4010 = vmatpush3.bf16.msra.mxu0 %v4141_v22  ;;  %v4147_v22 = vld [vmem:[%s5268_s11 + $0x50] ss:$8 sps:$4 sm:$0xff]  }
0x110b   :  { %4011 = vmatprep.subr.bf16.mxu0 %v4299_v6 }
0x110e   :  { %4012 = vmatpush3.bf16.msra.mxu0 %v4142_v23  ;;  %v4152_v23 = vld [vmem:[%s5268_s11 + $0x64] ss:$8 sps:$4 sm:$0xff]  }
0x110f   :  { %4013 = vmatprep.subr.bf16.mxu0 %v4299_v6 }
0x1112   :  { %4014 = vmatpush3.bf16.msra.mxu0 %v4143_v26  ;;  %v4153_v26 = vld [vmem:[%s5268_s11 + $0x70] ss:$8 sps:$4 sm:$0xff]  }
0x1139   :  { %v2538_v62 = vpop.f32.mrb[76].mxu1 }
0x113a   :  { %v3969_v63 = vpop.f32.mrb[77].mxu1 }
0x113b   :  { %v2541_v60 = vpop.f32.mrb[78].mxu1 }
0x113c   :  { %v3970_v0 = vpop.f32.mrb[79].mxu1 }
0x113d   :  { %v2492_v3 = vpop.f32.mrb[44].mxu0 }
0x113e   :  { %v3963_v5 = vpop.f32.mrb[45].mxu0 }
0x113f   :  { %v2495_v7 = vpop.f32.mrb[46].mxu0 }
0x1140   :  { %v3964_v9 = vpop.f32.mrb[47].mxu0 }
0x1196   :  { %v2584_v4 = vpop.f32.mrb[48].mxu0 }
0x1197   :  { %v3975_v1 = vpop.f32.mrb[49].mxu0 }
0x1198   :  { %v2587_v8 = vpop.f32.mrb[50].mxu0 }
0x1199   :  { %v3976_v11 = vpop.f32.mrb[51].mxu0 }
0x119a   :  { %v2630_v13 = vpop.f32.mrb[80].mxu1 }
0x119b   :  { %v4057_v14 = vpack.i.bf16 %v2630_v13, %v2584_v4  ;;  %v3981_v17 = vpop.f32.mrb[81].mxu1 }
0x119c   :  { %v2633_v19 = vpop.f32.mrb[82].mxu1  ;;  %v4146_v17 = vld [vmem:[%s5268_s11 + $0x44] ss:$8 sps:$4 sm:$0xff]  }
0x119d   :  { %v3982_v20 = vpop.f32.mrb[83].mxu1  ;;  %4058 = vrot.lane.b32.xlu1 %v4057_v14, %s5291_s27  ;;  %v4144_v19 = vld [vmem:[%s5268_s11 + $0x40] ss:$8 sps:$4 sm:$0xff]   ;;  %3050 = vmatprep.subr.bf16.mxu1 %v4146_v17 }
0x119e   :  { %3051 = vmatpush1.bf16.msra.mxu1 %v4144_v19  ;;  %v4149_v20 = vld [vmem:[%s5268_s11 + $0x54] ss:$8 sps:$4 sm:$0xff]  }
0x119f   :  { %3052 = vmatprep.subr.bf16.mxu1 %v4149_v20 }
0x11a2   :  { %3053 = vmatpush1.bf16.msra.mxu1 %v4147_v22 }
0x11a3   :  { %3054 = vmatprep.subr.bf16.mxu1 %v4152_v23 }
0x11cf   :  { %v2722_v25 = vpop.f32.mrb[84].mxu1 }
0x11d0   :  { %v2676_v15 = vpop.f32.mrb[52].mxu0  ;;  %v3993_v21 = vpop.f32.mrb[85].mxu1 }
0x11d1   :  { %v4062_v18 = vpack.i.bf16 %v2722_v25, %v2676_v15  ;;  %v3987_v27 = vpop.f32.mrb[53].mxu0  ;;  %v2725_v28 = vpop.f32.mrb[86].mxu1  ;;  %v4150_v25 = vld [vmem:[%s5268_s11 + $0x60] ss:$8 sps:$4 sm:$0xff]   ;;  %v4155_v15 = vld [vmem:[%s5268_s11 + $0x74] ss:$8 sps:$4 sm:$0xff]  }
0x11d2   :  { %v2679_v24 = vpop.f32.mrb[54].mxu0  ;;  %v3994_v29 = vpop.f32.mrb[87].mxu1  ;;  %3055 = vmatpush1.bf16.msra.mxu1 %v4150_v25 }
0x11d3   :  { %4063 = vrot.lane.b32.xlu0 %v4062_v18, %s5292_s20  ;;  %v3988_v30 = vpop.f32.mrb[55].mxu0  ;;  %3056 = vmatprep.subr.bf16.mxu1 %v4155_v15 }
0x11d6   :  { %3057 = vmatpush1.bf16.msra.mxu1 %v4153_v26 }
0x11d7   :  { %v2814_v31 = vpop.f32.mrb[88].mxu1  ;;  %4019 = vmatprep.subr.bf16.mxu1 %v4299_v6 }
0x11d8   :  { %v2768_v32 = vpop.f32.mrb[56].mxu0  ;;  %v4005_v33 = vpop.f32.mrb[89].mxu1 }
0x11d9   :  { %v4067_v42 = vpack.i.bf16 %v2814_v31, %v2768_v32  ;;  %v3999_v37 = vpop.f32.mrb[57].mxu0  ;;  %v2817_v38 = vpop.f32.mrb[90].mxu1  ;;  %v3594_v32 = vld [vmem:[%s5266_s9 + $0x1] ss:$0 sm:$0xff] }
0x11da   :  { %v2771_v35 = vpop.f32.mrb[58].mxu0  ;;  %v4006_v36 = vpop.f32.mrb[91].mxu1  ;;  %v3595_v38 = vld [vmem:[%s5267_s10 + $0x1] ss:$0 sm:$0xff] }
0x11db   :  { %4068 = vrot.lane.b32.xlu1 %v4067_v42, %s5293_s7  ;;  %v4000_v39 = vpop.f32.mrb[59].mxu0 }
0x120f   :  { %v4059_v52 = vpop.permute.xlu1 %4058 }
0x1210   :  { %v4061_v41 = vunpack.i.h.bf16 %v4059_v52  ;;  %v4060_v44 = vunpack.i.l.bf16 %v4059_v52 }
0x1212   :  { %v2845_v50 = vsel %vm404_vm2, %v2538_v62, %v4061_v41  ;;  %v2844_v43 = vsel %vm404_vm2, %v2492_v3, %v4060_v44  ;;  %v4157_v41 = vld [vmem:[%s5270_s13 + $0x80] sm:$0xff]   ;;  %v4158_v44 = vld [vmem:[%s5270_s13 + $0xc8] sm:$0xff]  }
0x1245   :  { %v4064_v40 = vpop.permute.xlu0 %4063 }
0x1246   :  { %v4066_v45 = vunpack.i.h.bf16 %v4064_v40  ;;  %v4065_v46 = vunpack.i.l.bf16 %v4064_v40  ;;  %v4156_v40 = vld [vmem:[%s5270_s13 + $0xc0] sm:$0xff]  }
0x1247   :  { %3776 = vmatprep.subr.bf16.mxu0 %v4156_v40 }
0x1248   :  { %v2846_v51 = vsel %vm1302_vm6, %v2844_v43, %v4065_v46  ;;  %v2847_v53 = vsel %vm1302_vm6, %v2845_v50, %v4066_v45  ;;  %v4159_v45 = vld [vmem:[%s5270_s13 + $0x88] sm:$0xff]   ;;  %v4160_v46 = vld [vmem:[%s5270_s13 + $0xd0] sm:$0xff]   ;;  %v4162_v50 = vld [vmem:[%s5270_s13 + $0xd8] sm:$0xff]  }
0x1249   :  { %v4163_v43 = vld [vmem:[%s5270_s13 + $0x98] sm:$0xff]  }
0x124d   :  { %v4069_v47 = vpop.permute.xlu1 %4068 }
0x124e   :  { %v4071_v49 = vunpack.i.h.bf16 %v4069_v47  ;;  %v4070_v48 = vunpack.i.l.bf16 %v4069_v47  ;;  %v4161_v47 = vld [vmem:[%s5270_s13 + $0x90] sm:$0xff]  }
0x1250   :  { %v2848_v55 = vsel %vm1305_vm7, %v2846_v51, %v4070_v48  ;;  %v2849_v56 = vsel %vm1305_vm7, %v2847_v53, %v4071_v49  ;;  %v4164_v49 = vld [vmem:[%s5270_s13 + $0xe0] sm:$0xff]   ;;  %v4166_v51 = vld [vmem:[%s5270_s13 + $0xe8] sm:$0xff]  }
0x1251   :  { %v2861_v57 = vpack.c.bf16 %v2849_v56, %v2848_v55  ;;  %v4165_v48 = vld [vmem:[%s5270_s13 + $0xa0] sm:$0xff]   ;;  %v4167_v53 = vld [vmem:[%s5270_s13 + $0xa8] sm:$0xff]   ;;  %v4168_v55 = vld [vmem:[%s5270_s13 + $0xf0] sm:$0xff]  }
0x1252   :  { %v4169_v56 = vld [vmem:[%s5270_s13 + $0xb0] sm:$0xff]  }
0x1253   :  { %4016 = vmatmul.mubr.msk.bf16.vlgmr.msra.gmra.mrb[60].mxu0 %vm166_vm0, %v2861_v57  ;;  %v4170_v57 = vld [vmem:[%s5270_s13 + $0xf8] sm:$0xff]  }
0x1254   :  { %3777 = vmatpush3.bf16.msra.mxu0 %v4157_v41 }
0x1255   :  { %3778 = vmatprep.subr.bf16.mxu0 %v4158_v44 }
0x1258   :  { %3779 = vmatpush3.bf16.msra.mxu0 %v4159_v45 }
0x1259   :  { %3780 = vmatprep.subr.bf16.mxu0 %v4160_v46 }
0x125c   :  { %3781 = vmatpush3.bf16.msra.mxu0 %v4161_v47 }
0x125d   :  { %3782 = vmatprep.subr.bf16.mxu0 %v4162_v50 }
0x1260   :  { %3783 = vmatpush3.bf16.msra.mxu0 %v4163_v43 }
0x1261   :  { %3784 = vmatprep.subr.bf16.mxu0 %v4164_v49  ;;  %v3647_v49 = vld [vmem:[%s5271_s14 + $0x1] ss:$0 sm:$0xff] }
0x1264   :  { %3785 = vmatpush3.bf16.msra.mxu0 %v4165_v48 }
0x1265   :  { %3786 = vmatprep.subr.bf16.mxu0 %v4166_v51 }
0x1268   :  { %3787 = vmatpush3.bf16.msra.mxu0 %v4167_v53 }
0x1269   :  { %3788 = vmatprep.subr.bf16.mxu0 %v4168_v55 }
0x126c   :  { %3789 = vmatpush3.bf16.msra.mxu0 %v4169_v56 }
0x126d   :  { %3790 = vmatprep.subr.bf16.mxu0 %v4170_v57 }
0x1326   :  { %v2929_v59 = vpop.f32.mrb[60].mxu0 }
0x1327   :  { %v2930_v61 = vadd.f32 %v3586_v58, %v2929_v59  ;;  %v4017_v54 = vpop.f32.mrb[61].mxu0  ;;  %v3604_v59 = vld [vmem:[%s5269_s12 + $0x2] sm:$0x3] }
0x1328   :  { %v2932_v62 = vpop.f32.mrb[62].mxu0  ;;  %v3004_v54 = vrot.slane %v3604_v59, %v4566_v34 }
0x1329   :  { %v5115_v63 = vadd.f32 %v2930_v61, %v4854_v12  ;;  %v2933_v60 = vadd.f32 %v3586_v58, %v2932_v62  ;;  %v4018_v0 = vpop.f32.mrb[63].mxu0  ;;  %v4171_v58 = vld [vmem:[%s5270_s13 + $0xb8] sm:$0xff]   ;;  %v3000_v61 = vrot.slane %v3604_v59, %v4521_v2 }
0x132a   :  { %3791 = vmatpush3.bf16.msra.mxu0 %v4171_v58 }
0x132b   :  { %v5118_v3 = vadd.f32 %v2933_v60, %v4857_v16  ;;  %v2942_v5 = vsel %vm166_vm0, %v5115_v63, 0.0 }
0x132c   :  { %2943 = vadd.xlane.f32.xlu0 %v2942_v5 }
0x132d   :  { %v2945_v7 = vsel %vm166_vm0, %v5118_v3, 0.0 }
0x132e   :  { %2946 = vadd.xlane.f32.xlu1 %v2945_v7 }
0x13b9   :  { %v2944_v9 = vpop.xlane.xlu0 %2943 }
0x13ba   :  { %v2948_v10 = vmul.f32 0.015625, %v2944_v9 }
0x13bb   :  { %v2947_v4 = vpop.xlane.xlu1 %2946 }
0x13bc   :  { %v2950_v1 = vsub.f32 %v5115_v63, %v2948_v10  ;;  %v2949_v12 = vmul.f32 0.015625, %v2947_v4 }
0x13be   :  { %v2951_v8 = vsub.f32 %v5118_v3, %v2949_v12  ;;  %v2952_v11 = vmul.f32 %v2950_v1, %v2950_v1 }
0x13c0   :  { %v2954_v16 = vsel %vm166_vm0, %v2952_v11, 0.0  ;;  %v2953_v13 = vmul.f32 %v2951_v8, %v2951_v8 }
0x13c1   :  { %2955 = vadd.xlane.f32.xlu0 %v2954_v16 }
0x13c2   :  { %v2957_v14 = vsel %vm166_vm0, %v2953_v13, 0.0 }
0x13c5   :  { %2958 = vadd.xlane.f32.xlu0 %v2957_v14 }
0x144e   :  { %v2956_v21 = vpop.xlane.xlu0 %2955 }
0x144f   :  { %v2960_v18 = vmul.f32 0.015625, %v2956_v21 }
0x1451   :  { %v2962_v27 = vadd.f32 1e-12, %v2960_v18 }
0x1452   :  { %v2959_v28 = vpop.xlane.xlu0 %2958 }
0x1453   :  { %4260 = vrsqrt.f32 %v2962_v27  ;;  %v2961_v24 = vmul.f32 0.015625, %v2959_v28 }
0x1455   :  { %v2963_v29 = vadd.f32 1e-12, %v2961_v24 }
0x1457   :  { %4262 = vrsqrt.f32 %v2963_v29 }
0x145d   :  { %v4261_v30 = vpop.eup %4260 }
0x145e   :  { %v2966_v31 = vmul.f32 %v4261_v30, %v2950_v1 }
0x1460   :  { %v2974_v42 = vmul.f32 %v3594_v32, %v2966_v31 }
0x1461   :  { %v4263_v33 = vpop.eup %4262 }
0x1462   :  { %v2967_v37 = vmul.f32 %v4263_v33, %v2951_v8  ;;  %v2982_v36 = vadd.f32 %v3595_v38, %v2974_v42 }
0x1464   :  { %v2975_v35 = vmul.f32 %v3594_v32, %v2967_v37 }
0x1466   :  { %v2983_v39 = vadd.f32 %v3595_v38, %v2975_v35 }
0x1468   :  { %v2995_v52 = vpack.c.bf16 %v2983_v39, %v2982_v36 }
0x146a   :  { %3613 = vmatmul.mubr.msk.bf16.vlgmr.msra.gmra.mrb[92].mxu1 %vm166_vm0, %v2995_v52 }
0x146b   :  { %4027 = vmatprep.mubr.msk.bf16.mxu1 %vm4301_vm1, %v4299_v6 }
0x153d   :  { %v3084_v62 = vpop.f32.mrb[92].mxu1 }
0x153e   :  { %v3085_v60 = vadd.f32 %v3084_v62, %v3000_v61  ;;  %v3086_v0 = vpop.f32.mrb[93].mxu1 }
0x153f   :  { %v3087_v5 = vadd.f32 %v3086_v0, %v3004_v54  ;;  %v3088_v7 = vpop.f32.mrb[94].mxu1 }
0x1540   :  { %v3093_v9 = vmul.f32 %v3085_v60, %v3085_v60  ;;  %v3089_v10 = vadd.f32 %v3088_v7, %v3000_v61  ;;  %v3090_v4 = vpop.f32.mrb[95].mxu1  ;;  %v4172_v7 = vld [vmem:[%s5274_s17] sm:$0xff]  }
0x1541   :  { %v3094_v1 = vmul.f32 %v3087_v5, %v3087_v5  ;;  %v3091_v12 = vadd.f32 %v3090_v4, %v3004_v54  ;;  %4020 = vmatpush3.bf16.msra.mxu1 %v4172_v7 }
0x1542   :  { %v3097_v8 = vmul.f32 %v3093_v9, %v3085_v60  ;;  %v3095_v11 = vmul.f32 %v3089_v10, %v3089_v10  ;;  %4021 = vmatprep.subr.bf16.mxu1 %v4299_v6  ;;  %v4175_v9 = vld [vmem:[%s5274_s17 + $0x18] sm:$0xff]  }
0x1543   :  { %v3098_v16 = vmul.f32 %v3094_v1, %v3087_v5  ;;  %v3096_v13 = vmul.f32 %v3091_v12, %v3091_v12 }
0x1544   :  { %v3101_v14 = vmul.f32 0.044715, %v3097_v8  ;;  %v3099_v17 = vmul.f32 %v3095_v11, %v3089_v10  ;;  %v3664_v8 = vld [vmem:[%s5272_s15] ss:$0 sm:$0xff]  ;;  %s4274_s15 = scalar_lea.vmem %s3438_s8, 32 }
0x1545   :  { %v3102_v19 = vmul.f32 0.044715, %v3098_v16  ;;  %v3100_v2 = vmul.f32 %v3096_v13, %v3091_v12  ;;  %v3665_v16 = vld [vmem:[%s5273_s16] ss:$0 sm:$0xff]  ;;  %p4275_p0 = scmp.ne.s32.totalorder %s3438_s8, %s4274_s15  ;;  %p4280_p2 = scmp.lt.s32.totalorder %s4274_s15, %s4274_s15 }
0x1546   :  { %v3105_v20 = vadd.f32 %v3101_v14, %v3085_v60  ;;  %v3103_v34 = vmul.f32 0.044715, %v3099_v17 }
0x1547   :  { %v3106_v22 = vadd.f32 %v3102_v19, %v3087_v5  ;;  %v3104_v23 = vmul.f32 0.044715, %v3100_v2  ;;  %p4281_p3 = por %p4280_p2, %p4279_p1 }
0x1548   :  { %v3109_v25 = vmul.f32 0.7978846, %v3105_v20  ;;  %v3107_v26 = vadd.f32 %v3103_v34, %v3089_v10 }
0x1549   :  { %v3110_v15 = vmul.f32 0.7978846, %v3106_v22  ;;  %v3108_v21 = vadd.f32 %v3104_v23, %v3091_v12  ;;  %p4282_p4 = pnand %p4281_p3, %p4275_p0 }
0x154a   :  { %4264 = vtanh.f32 %v3109_v25  ;;  %v3111_v18 = vmul.f32 0.7978846, %v3107_v26 }
0x154b   :  { %4266 = vtanh.f32 %v3110_v15  ;;  %v3112_v27 = vmul.f32 0.7978846, %v3108_v21 }
0x154c   :  { %4268 = vtanh.f32 %v3111_v18 }
0x154d   :  { %4270 = vtanh.f32 %v3112_v27 }
0x1554   :  { %v4265_v28 = vpop.eup %4264 }
0x1555   :  { %v4267_v24 = vpop.eup %4266  ;;  %v3117_v29 = vadd.f32 1.0, %v4265_v28 }
0x1556   :  { %v4269_v30 = vpop.eup %4268  ;;  %v3118_v31 = vadd.f32 1.0, %v4267_v24 }
0x1557   :  { %v4271_v32 = vpop.eup %4270  ;;  %v3121_v33 = vmul.f32 0.5, %v3117_v29  ;;  %v3119_v42 = vadd.f32 1.0, %v4269_v30 }
0x1558   :  { %v3120_v37 = vadd.f32 1.0, %v4271_v32  ;;  %v3122_v38 = vmul.f32 0.5, %v3118_v31 }
0x1559   :  { %v3123_v35 = vmul.f32 0.5, %v3119_v42  ;;  %v3125_v39 = vmul.f32 %v3121_v33, %v3085_v60 }
0x155a   :  { %v3124_v36 = vmul.f32 0.5, %v3120_v37  ;;  %v3126_v40 = vmul.f32 %v3122_v38, %v3087_v5 }
0x155b   :  { %v3127_v52 = vmul.f32 %v3123_v35, %v3089_v10 }
0x155c   :  { %v3128_v41 = vmul.f32 %v3124_v36, %v3091_v12 }
0x155d   :  { %v3164_v44 = vpack.c.bf16 %v3127_v52, %v3125_v39 }
0x155e   :  { %v3165_v45 = vpack.c.bf16 %v3128_v41, %v3126_v40 }
0x1560   :  { %3300 = vmatprep.mubr.bf16.mxu0 %v3165_v45 }
0x1561   :  { %3301 = vmatmul.mubr.bf16.vlgmr.msra.gmra.mrb[64].mxu0 %v3164_v44 }
0x1634   :  { %v3792_v46 = vpop.f32.mrb[64].mxu0 }
0x1635   :  { %v3793_v47 = vpop.f32.mrb[65].mxu0 }
0x1636   :  { %v3794_v50 = vadd.f32 %v3793_v47, %v3792_v46  ;;  %v3795_v43 = vpop.f32.mrb[66].mxu0 }
0x1637   :  { %v3796_v48 = vpop.f32.mrb[67].mxu0 }
0x1638   :  { %v3797_v51 = vadd.f32 %v3796_v48, %v3795_v43  ;;  %v3303_v53 = vadd.f32 %v3794_v50, %v3647_v49 }
0x163a   :  { %v3306_v55 = vadd.f32 %v3797_v51, %v3647_v49  ;;  %v3309_v57 = vadd.f32 %v3303_v53, %v5115_v63  ;;  %v4173_v63 = vld [vmem:[%s5274_s17 + $0x8] sm:$0xff]  }
0x163b   :  { %4022 = vmatpush3.bf16.msra.mxu1 %v4173_v63 }
0x163c   :  { %v3310_v56 = vadd.f32 %v3306_v55, %v5118_v3  ;;  %4023 = vmatprep.subr.bf16.mxu1 %v4299_v6  ;;  %v4174_v3 = vld [vmem:[%s5274_s17 + $0x10] sm:$0xff]  }
0x163e   :  { %v3312_v58 = vrot.slane %v3310_v56, 7 }
0x163f   :  { %4024 = vmatpush3.bf16.msra.mxu1 %v4174_v3 }
0x1640   :  { %v3315_v59 = vsel %vm3314_vm8, %v3309_v57, %v3312_v58  ;;  %4025 = vmatprep.subr.bf16.mxu1 %v4299_v6  ;;  %v3666_v6 = vld [vmem:[%s5275_s18] ss:$0 sm:$0xff] }
0x1641   :  { %v3319_v61 = vsel %vm3318_vm9, %v3315_v59, 0.0 }
0x1642   :  { %3320 = vadd.xlane.f32.xlu0 %v3319_v61 }
0x1643   :  { %4026 = vmatpush3.bf16.msra.mxu1 %v4175_v9 }
0x16cf   :  { %v3321_v54 = vpop.xlane.xlu0 %3320 }
0x16d0   :  { %v3322_v62 = vmul.f32 0.015625, %v3321_v54 }
0x16d2   :  { %v3323_v60 = vsub.f32 %v3315_v59, %v3322_v62 }
0x16d4   :  { %v3324_v0 = vmul.f32 %v3323_v60, %v3323_v60 }
0x16d6   :  { %v3325_v5 = vsel %vm3318_vm9, %v3324_v0, 0.0 }
0x16d7   :  { %3326 = vadd.xlane.f32.xlu1 %v3325_v5 }
0x1764   :  { %v3327_v10 = vpop.xlane.xlu1 %3326 }
0x1765   :  { %v3328_v4 = vmul.f32 0.015625, %v3327_v10 }
0x1767   :  { %v3329_v1 = vadd.f32 1e-12, %v3328_v4 }
0x1769   :  { %4272 = vrsqrt.f32 %v3329_v1 }
0x1773   :  { %v4273_v12 = vpop.eup %4272 }
0x1774   :  { %v3331_v11 = vmul.f32 %v4273_v12, %v3323_v60 }
0x1776   :  { %v3338_v13 = vmul.f32 %v3664_v8, %v3331_v11 }
0x1778   :  { %v3345_v14 = vadd.f32 %v3665_v16, %v3338_v13 }
0x177a   :  { %v3355_v17 = vpack.c.bf16 %v3345_v14, %v3345_v14 }
0x177c   :  { %4028 = vmatmul.mubr.msk.bf16.vlgmr.msra.gmra.mrb[96].mxu1 %vm166_vm0, %v3355_v17 }
0x184f   :  { %v3423_v19 = vpop.f32.mrb[96].mxu1 }
0x1850   :  { %v3424_v2 = vadd.f32 %v3666_v6, %v3423_v19  ;;  %v4029_v20 = vpop.f32.mrb[97].mxu1 }
0x1851   :  { %v3426_v34 = vpop.f32.mrb[98].mxu1 }
0x1852   :  { %v4030_v22 = vpop.f32.mrb[99].mxu1  ;;  %3430 = vst.msk [vmem:[#allocation2] sm:$0x3] %vm3429_vm10, %v3424_v2 }
0x1853   :  { %4285 = shalt.err (!%p4282_p4)
}
0x1854   :  { %s4286_s18 = scalar_lea.hbm %s5276_s19, 32 }
0x1855   :  { %p4287_p5 = scmp.ne.s32.totalorder %s5276_s19, %s4286_s18  ;;  %p4290_p6 = scmp.lt.u32.totalorder %s4286_s18, %s5276_s19 }
0x1857   :  { %p4292_p7 = pnand %p4290_p6, %p4287_p5 }
0x1859   :  { %4295 = shalt.err (!%p4292_p7)
}
0x185a   :  { %3440 = dma.vmem_to_hbm [thread:$0]  %s3438_s8, 32, %s5276_s19, [#allocation3]  }
0x185b   :  { %4296 = dma.done.wait [#allocation3], 32  }
0x185c   :  { %4297 = vsyncadd [#allocation3], 4294967264 }
0x185d   :  { %3444 = vsyncpa [#allocation3], 1 }

</bundles_post_ra>
